<compile_context>
chip_gen: v7x
topology: tpu7x:2x2x1
jax: 0.10.0
libtpu: 0.0.40
codegen_flags: <defaults>
</compile_context>

<pallas_src>
import jax
import jax.numpy as jnp
from jax.experimental import pallas as pl
from jax.experimental.pallas import tpu as pltpu

# ----------------------- small ViT-like configuration -----------------------
IMG = 16          # image spatial size
PATCH = 8         # patch size -> 2x2 = 4 patches
IN_CH = 3         # RGB
EMBED = 32        # hidden width
HEADS = 4
HEAD_DIM = EMBED // HEADS
MLP = 64
LAYERS = 2
EPS = 1e-5
SEQ = (IMG // PATCH) ** 2 + 1          # 5 tokens (cls + 4 patches)
PDIM = IN_CH * PATCH * PATCH           # 192
BSLAB_W = 3 * EMBED                    # widest f32 bias row (qkv bias)

# ----------------- static row offsets inside the weight slabs ---------------
# bf16 slab, width EMBED (32)
W32_PATCH = 0
W32_PROJ = W32_PATCH + PDIM                    # + l*EMBED
W32_FC2 = W32_PROJ + LAYERS * EMBED            # + l*MLP
W32_POOLQ = W32_FC2 + LAYERS * MLP
W32_POOLO = W32_POOLQ + EMBED
W32_ROWS = W32_POOLO + EMBED                   # 448

# bf16 slab, width MLP / 2*EMBED (64)
W64_FC1 = 0                                    # + l*EMBED
W64_POOLKV = LAYERS * EMBED
W64_ROWS = W64_POOLKV + EMBED                  # 96

# bf16 slab, width 3*EMBED (96)
W96_QKV = 0                                    # + l*EMBED
W96_ROWS = LAYERS * EMBED                      # 64

# f32 bias/LN slab, width BSLAB_W (rows zero-padded to 96 lanes)
B_TOK = 0                                      # SEQ rows (cls/pos token bias)
B_PATCHB = B_TOK + SEQ
B_BLK = B_PATCHB + 1
B_BLK_STRIDE = 8
(B_LN1G, B_LN1B, B_QKVB, B_PROJB, B_LN2G, B_LN2B, B_FC1B, B_FC2B) = range(8)
B_LNFG = B_BLK + LAYERS * B_BLK_STRIDE
B_LNFB = B_LNFG + 1
B_PQUERY = B_LNFB + 1
B_PQB = B_PQUERY + 1
B_PKVB = B_PQB + 1
B_POB = B_PKVB + 1
B_ROWS = B_POB + 1                             # 28


# ------------------------------ fused kernel --------------------------------
def _conch_kernel(patches_ref, w32_ref, w64_ref, w96_ref, b_ref, out_ref):
    f32, bf16 = jnp.float32, jnp.bfloat16
    BS = patches_ref.shape[0]          # B * SEQ (static)
    B = BS // SEQ
    scale = 1.0 / float(HEAD_DIM) ** 0.5

    def mm(x, w):
        # bf16 MXU operands, f32 accumulation.
        return jnp.dot(x.astype(bf16), w.astype(bf16), preferred_element_type=f32)

    def qkt(q, k):
        # q:[m,E] k:[n,E] -> [m,n]; contract the embedding dim of both.
        return jax.lax.dot_general(
            q.astype(bf16), k.astype(bf16),
            dimension_numbers=(((1,), (1,)), ((), ())),
            preferred_element_type=f32)

    def brow(r, width=EMBED):
        return b_ref[r:r + 1, 0:width]          # static [1, width] slice

    def layernorm(x, g, b):
        mu = jnp.mean(x, axis=-1, keepdims=True)
        xc = x - mu
        var = jnp.mean(xc * xc, axis=-1, keepdims=True)
        return xc * jax.lax.rsqrt(var + EPS) * g + b

    def erf(t):
        # Abramowitz-Stegun 7.1.26, |err| < 1.5e-7 -> exact GELU without lax.erf.
        a1, a2, a3, a4, a5 = 0.254829592, -0.284496736, 1.421413741, -1.453152027, 1.061405429
        p = 0.3275911
        sgn = jnp.where(t >= 0.0, 1.0, -1.0)
        at = jnp.abs(t)
        u = 1.0 / (1.0 + p * at)
        poly = ((((a5 * u + a4) * u + a3) * u + a2) * u + a1) * u
        return sgn * (1.0 - poly * jnp.exp(-at * at))

    def gelu(t):  # exact (erf) GELU, like PyTorch/timm CONCH
        return 0.5 * t * (1.0 + erf(t * 0.7071067811865476))

    def softmax(s):
        s = s - jnp.max(s, axis=-1, keepdims=True)
        p = jnp.exp(s)
        return p / jnp.sum(p, axis=-1, keepdims=True)   # exact reciprocal path

    # --- constant masks, hoisted once (JAX does not CSE broadcasts) ---------
    def make_head_mask(rows_per_head):
        lane = jax.lax.broadcasted_iota(jnp.int32, (rows_per_head, EMBED), 1)
        blocks = [((lane >= h * HEAD_DIM) & (lane < (h + 1) * HEAD_DIM)).astype(f32)
                  for h in range(HEADS)]
        return jnp.concatenate(blocks, axis=0)           # [HEADS*rows_per_head, E]

    def make_seg_bias(rows_per_img):
        # Additive bias: 0 where query row and key column belong to the same
        # image, -1e30 otherwise (block-diagonal attention over the batch).
        col = jax.lax.broadcasted_iota(jnp.int32, (rows_per_img, BS), 1)
        per_img = [jnp.where((col >= b * SEQ) & (col < (b + 1) * SEQ),
                             0.0, -1e30).astype(f32) for b in range(B)]
        blk = jnp.concatenate(per_img, axis=0)            # [B*rows_per_img, BS]
        return jnp.concatenate([blk] * HEADS, axis=0)     # [HEADS*B*rpi, BS]

    hmask_tok, bias_tok = make_head_mask(BS), make_seg_bias(SEQ)
    hmask_pool, bias_pool = make_head_mask(B), make_seg_bias(1)

    def mha(q, k, v, hmask, bias, n_rows):
        # All heads in ONE QK^T and ONE P@V: Q is replicated per head and lane-
        # masked to its head block, so the E-contraction only touches that
        # head's lanes of K.  The head "concat" is mask + row-block sum, which
        # lands directly in the fused [*, E] lane layout for the out-projection.
        qbig = jnp.concatenate([q] * HEADS, axis=0) * hmask     # [H*n, E]
        s = qkt(qbig, k) * scale + bias                         # [H*n, BS]
        p = softmax(s)
        pv = mm(p, v) * hmask                                   # [H*n, E]
        o = pv[0:n_rows]
        for h in range(1, HEADS):
            o = o + pv[h * n_rows:(h + 1) * n_rows]
        return o                                                # [n, E]

    # ---- patch embed + cls + pos --------------------------------------------
    # Row 0 of each image's block is a zero "virtual patch"; the tok bias
    # (cls + pos, with patch_b cancelled for that row) turns it into the cls
    # token after one shared matmul.
    tok = b_ref[B_TOK:B_TOK + SEQ, 0:EMBED]
    tok = jnp.concatenate([tok] * B, axis=0)                    # [BS, E]
    x = mm(patches_ref[...], w32_ref[W32_PATCH:W32_PATCH + PDIM, :]) \
        + brow(B_PATCHB) + tok                                  # [BS, E]

    # ---- transformer blocks (pre-LN), statically unrolled -------------------
    for l in range(LAYERS):
        base = B_BLK + l * B_BLK_STRIDE
        xn = layernorm(x, brow(base + B_LN1G), brow(base + B_LN1B))
        qkv = mm(xn, w96_ref[W96_QKV + l * EMBED:W96_QKV + (l + 1) * EMBED, :]) \
              + brow(base + B_QKVB, 3 * EMBED)                  # [BS, 3E]
        o = mha(qkv[:, 0:EMBED], qkv[:, EMBED:2 * EMBED], qkv[:, 2 * EMBED:3 * EMBED],
                hmask_tok, bias_tok, BS)
        x = x + mm(o, w32_ref[W32_PROJ + l * EMBED:W32_PROJ + (l + 1) * EMBED, :]) \
              + brow(base + B_PROJB)

        xn = layernorm(x, brow(base + B_LN2G), brow(base + B_LN2B))
        hdn = gelu(mm(xn, w64_ref[W64_FC1 + l * EMBED:W64_FC1 + (l + 1) * EMBED, :])
                   + brow(base + B_FC1B, MLP))                  # [BS, MLP]
        x = x + mm(hdn, w32_ref[W32_FC2 + l * MLP:W32_FC2 + (l + 1) * MLP, :]) \
              + brow(base + B_FC2B)

    # ---- final LN + single-query attentional pooler --------------------------
    # proj_contrast=False -> no contrastive projection; normalize=False -> no L2.
    xn = layernorm(x, brow(B_LNFG), brow(B_LNFB))
    qp = mm(brow(B_PQUERY), w32_ref[W32_POOLQ:W32_POOLQ + EMBED, :]) + brow(B_PQB)
    qp = jnp.broadcast_to(qp, (B, EMBED))                        # same query per image
    kv = mm(xn, w64_ref[W64_POOLKV:W64_POOLKV + EMBED, :]) + brow(B_PKVB, 2 * EMBED)
    o = mha(qp, kv[:, 0:EMBED], kv[:, EMBED:2 * EMBED], hmask_pool, bias_pool, B)
    pooled = mm(o, w32_ref[W32_POOLO:W32_POOLO + EMBED, :]) + brow(B_POB)
    out_ref[...] = pooled.astype(out_ref.dtype)


def _fused_forward(patches_aug, w32, w64, w96, bslab):
    BS = patches_aug.shape[0]
    B = BS // SEQ
    args = (patches_aug, w32, w64, w96, bslab)
    vmem = pltpu.MemorySpace.VMEM
    return pl.pallas_call(
        _conch_kernel,
        out_shape=jax.ShapeDtypeStruct((B, EMBED), jnp.float32),
        # No grid: everything is a whole-array VMEM block, so there is no
        # pipeline / double-buffering and exactly 5 input DMAs + 1 output DMA.
        in_specs=[pl.BlockSpec(memory_space=vmem) for _ in args],
        out_specs=pl.BlockSpec(memory_space=vmem),
        cost_estimate=pl.CostEstimate(
            flops=800_000, transcendentals=4_000, bytes_accessed=72_000),
    )(*args)


# ------------------------- parameter init & packing -------------------------
def init_params(key):
    keys = iter(jax.random.split(key, 128))

    def nrm(shape, scale=0.02):
        return scale * jax.random.normal(next(keys), shape, dtype=jnp.float32)

    blocks = []
    for _ in range(LAYERS):
        blocks.append(dict(
            ln1_g=jnp.ones((EMBED,), jnp.float32), ln1_b=jnp.zeros((EMBED,), jnp.float32),
            qkv_w=nrm((EMBED, 3 * EMBED)), qkv_b=jnp.zeros((3 * EMBED,), jnp.float32),
            proj_w=nrm((EMBED, EMBED)), proj_b=jnp.zeros((EMBED,), jnp.float32),
            ln2_g=jnp.ones((EMBED,), jnp.float32), ln2_b=jnp.zeros((EMBED,), jnp.float32),
            fc1_w=nrm((EMBED, MLP)), fc1_b=jnp.zeros((MLP,), jnp.float32),
            fc2_w=nrm((MLP, EMBED)), fc2_b=jnp.zeros((EMBED,), jnp.float32),
        ))

    pool = dict(
        query=nrm((1, EMBED)),
        q_w=nrm((EMBED, EMBED)), q_b=jnp.zeros((EMBED,), jnp.float32),
        k_w=nrm((EMBED, EMBED)), k_b=jnp.zeros((EMBED,), jnp.float32),
        v_w=nrm((EMBED, EMBED)), v_b=jnp.zeros((EMBED,), jnp.float32),
        o_w=nrm((EMBED, EMBED)), o_b=jnp.zeros((EMBED,), jnp.float32),
    )

    return dict(
        patch_w=nrm((PDIM, EMBED)),
        patch_b=jnp.zeros((EMBED,), jnp.float32),
        cls=nrm((1, EMBED)),
        pos=nrm((SEQ, EMBED)),
        lnf_g=jnp.ones((EMBED,), jnp.float32), lnf_b=jnp.zeros((EMBED,), jnp.float32),
        blocks=blocks,
        pool=pool,
    )


def _prepare_weights(params):
    """Trace-time packing of all parameters into 4 slabs:
       - w32 : bf16 [448, 32]  matmul weights with 32-wide outputs
       - w64 : bf16 [ 96, 64]  matmul weights with 64-wide outputs (fc1, pool K|V)
       - w96 : bf16 [ 64, 96]  fused QKV weights
       - bslab: f32 [ 28, 96]  LN gains/biases, biases, tok (cls+pos) and pooler query,
                               each row zero-padded to 96 lanes.
       Row offsets match the module-level constants used by the kernel."""
    f32 = jnp.float32
    blocks = params["blocks"]
    pool = params["pool"]

    w32 = jnp.concatenate(
        [params["patch_w"]]
        + [blk["proj_w"] for blk in blocks]
        + [blk["fc2_w"] for blk in blocks]
        + [pool["q_w"], pool["o_w"]], axis=0).astype(jnp.bfloat16)       # [448, 32]

    pool_kv_w = jnp.concatenate([pool["k_w"], pool["v_w"]], axis=1)       # [32, 64]
    w64 = jnp.concatenate([blk["fc1_w"] for blk in blocks] + [pool_kv_w],
                          axis=0).astype(jnp.bfloat16)                    # [96, 64]

    w96 = jnp.concatenate([blk["qkv_w"] for blk in blocks],
                          axis=0).astype(jnp.bfloat16)                    # [64, 96]

    def row(v):
        v = v.reshape(1, -1).astype(f32)
        return jnp.pad(v, ((0, 0), (0, BSLAB_W - v.shape[1])))

    # Token bias: row 0 = cls + pos[0] - patch_b (the kernel adds patch_b to the
    # zero "virtual patch" row too), rows 1.. = pos.
    tok = params["pos"].at[0].add(params["cls"][0] - params["patch_b"])
    tok = jnp.pad(tok.astype(f32), ((0, 0), (0, BSLAB_W - EMBED)))

    rows = [tok, row(params["patch_b"])]
    for blk in blocks:
        rows += [row(blk["ln1_g"]), row(blk["ln1_b"]), row(blk["qkv_b"]),
                 row(blk["proj_b"]), row(blk["ln2_g"]), row(blk["ln2_b"]),
                 row(blk["fc1_b"]), row(blk["fc2_b"])]
    rows += [row(params["lnf_g"]), row(params["lnf_b"]),
             row(pool["query"]), row(pool["q_b"]),
             row(jnp.concatenate([pool["k_b"], pool["v_b"]])), row(pool["o_b"])]
    bslab = jnp.concatenate(rows, axis=0)                                  # [28, 96]

    assert w32.shape == (W32_ROWS, EMBED)
    assert w64.shape == (W64_ROWS, MLP)
    assert w96.shape == (W96_ROWS, 3 * EMBED)
    assert bslab.shape == (B_ROWS, BSLAB_W)
    return w32, w64, w96, bslab


# ------------------------------- forward pass --------------------------------
@jax.jit
def encode_image(params, batch):
    """Equivalent of model.encode_image(batch, proj_contrast=False, normalize=False)."""
    B, C, H, W = batch.shape
    hp, wp = H // PATCH, W // PATCH
    n_patch = hp * wp

    # Patchify NCHW -> [B, n_patch, C*P*P] (tiny XLA fusion; kept host-side to
    # avoid risky in-kernel NCHW relayouts), then prepend one zero "virtual
    # patch" row per image (becomes the cls slot via the tok bias) and flatten
    # the batch into sublanes: [B*SEQ, PDIM].
    patches = batch.reshape(B, C, hp, PATCH, wp, PATCH)
    patches = patches.transpose(0, 2, 4, 1, 3, 5).reshape(B, n_patch, C * PATCH * PATCH)
    patches_aug = jnp.concatenate(
        [jnp.zeros((B, 1, patches.shape[-1]), patches.dtype), patches], axis=1)
    patches_aug = patches_aug.reshape(B * SEQ, PDIM)

    w32, w64, w96, bslab = _prepare_weights(params)
    return _fused_forward(patches_aug, w32, w64, w96, bslab)


# ----------------------------------- main ------------------------------------
if __name__ == "__main__":
    key = jax.random.PRNGKey(0)
    pkey, xkey = jax.random.split(key)
    params = init_params(pkey)
    batch = jax.random.normal(xkey, (2, IN_CH, IMG, IMG), dtype=jnp.float32)  # NCHW

    out = encode_image(params, batch)
    out = jax.block_until_ready(out)
    assert out.shape == (2, EMBED), out.shape
    assert bool(jnp.all(jnp.isfinite(out)))
    print("KERNEL_OK")
</pallas_src>

<mosaic_0001>
module attributes {stable_mosaic.version = 11 : i64} {
  func.func @_conch_kernel(%arg0: memref<10x192xf32, #tpu.memory_space<vmem>>, %arg1: memref<448x32xbf16, #tpu.memory_space<vmem>>, %arg2: memref<96x64xbf16, #tpu.memory_space<vmem>>, %arg3: memref<64x96xbf16, #tpu.memory_space<vmem>>, %arg4: memref<28x96xf32, #tpu.memory_space<vmem>>, %arg5: memref<2x32xf32, #tpu.memory_space<vmem>>) attributes {dimension_semantics = [], scalar_prefetch = 0 : i64, scratch_operands = 0 : i64, tpu.core_type = #tpu.core_type<tc>} {
    %0 = tpu.iota {dimensions = array<i32: 1>} : vector<10x32xi32>
    %c0_i32 = arith.constant 0 : i32
    %1 = vector.broadcast %c0_i32 : i32 to vector<10x32xi32>
    %2 = arith.cmpi sge, %0, %1 : vector<10x32xi32>
    %c8_i32 = arith.constant 8 : i32
    %3 = vector.broadcast %c8_i32 : i32 to vector<10x32xi32>
    %4 = arith.cmpi slt, %0, %3 : vector<10x32xi32>
    %5 = arith.andi %2, %4 : vector<10x32xi1>
    %6 = arith.extui %5 : vector<10x32xi1> to vector<10x32xi32>
    %7 = arith.sitofp %6 : vector<10x32xi32> to vector<10x32xf32>
    %c8_i32_0 = arith.constant 8 : i32
    %8 = vector.broadcast %c8_i32_0 : i32 to vector<10x32xi32>
    %9 = arith.cmpi sge, %0, %8 : vector<10x32xi32>
    %c16_i32 = arith.constant 16 : i32
    %10 = vector.broadcast %c16_i32 : i32 to vector<10x32xi32>
    %11 = arith.cmpi slt, %0, %10 : vector<10x32xi32>
    %12 = arith.andi %9, %11 : vector<10x32xi1>
    %13 = arith.extui %12 : vector<10x32xi1> to vector<10x32xi32>
    %14 = arith.sitofp %13 : vector<10x32xi32> to vector<10x32xf32>
    %c16_i32_1 = arith.constant 16 : i32
    %15 = vector.broadcast %c16_i32_1 : i32 to vector<10x32xi32>
    %16 = arith.cmpi sge, %0, %15 : vector<10x32xi32>
    %c24_i32 = arith.constant 24 : i32
    %17 = vector.broadcast %c24_i32 : i32 to vector<10x32xi32>
    %18 = arith.cmpi slt, %0, %17 : vector<10x32xi32>
    %19 = arith.andi %16, %18 : vector<10x32xi1>
    %20 = arith.extui %19 : vector<10x32xi1> to vector<10x32xi32>
    %21 = arith.sitofp %20 : vector<10x32xi32> to vector<10x32xf32>
    %c24_i32_2 = arith.constant 24 : i32
    %22 = vector.broadcast %c24_i32_2 : i32 to vector<10x32xi32>
    %23 = arith.cmpi sge, %0, %22 : vector<10x32xi32>
    %c32_i32 = arith.constant 32 : i32
    %24 = vector.broadcast %c32_i32 : i32 to vector<10x32xi32>
    %25 = arith.cmpi slt, %0, %24 : vector<10x32xi32>
    %26 = arith.andi %23, %25 : vector<10x32xi1>
    %27 = arith.extui %26 : vector<10x32xi1> to vector<10x32xi32>
    %28 = arith.sitofp %27 : vector<10x32xi32> to vector<10x32xf32>
    %29 = tpu.concatenate %7, %14, %21, %28 in 0 : vector<10x32xf32>, vector<10x32xf32>, vector<10x32xf32>, vector<10x32xf32> -> vector<40x32xf32>
    %30 = tpu.iota {dimensions = array<i32: 1>} : vector<5x10xi32>
    %c0_i32_3 = arith.constant 0 : i32
    %31 = vector.broadcast %c0_i32_3 : i32 to vector<5x10xi32>
    %32 = arith.cmpi sge, %30, %31 : vector<5x10xi32>
    %c5_i32 = arith.constant 5 : i32
    %33 = vector.broadcast %c5_i32 : i32 to vector<5x10xi32>
    %34 = arith.cmpi slt, %30, %33 : vector<5x10xi32>
    %35 = arith.andi %32, %34 : vector<5x10xi1>
    %cst = arith.constant 0.000000e+00 : f32
    %cst_4 = arith.constant -1.000000e+30 : f32
    %36 = vector.broadcast %cst : f32 to vector<5x10xf32>
    %37 = vector.broadcast %cst_4 : f32 to vector<5x10xf32>
    %38 = arith.select %35, %36, %37 : vector<5x10xi1>, vector<5x10xf32>
    %c5_i32_5 = arith.constant 5 : i32
    %39 = vector.broadcast %c5_i32_5 : i32 to vector<5x10xi32>
    %40 = arith.cmpi sge, %30, %39 : vector<5x10xi32>
    %c10_i32 = arith.constant 10 : i32
    %41 = vector.broadcast %c10_i32 : i32 to vector<5x10xi32>
    %42 = arith.cmpi slt, %30, %41 : vector<5x10xi32>
    %43 = arith.andi %40, %42 : vector<5x10xi1>
    %cst_6 = arith.constant 0.000000e+00 : f32
    %cst_7 = arith.constant -1.000000e+30 : f32
    %44 = vector.broadcast %cst_6 : f32 to vector<5x10xf32>
    %45 = vector.broadcast %cst_7 : f32 to vector<5x10xf32>
    %46 = arith.select %43, %44, %45 : vector<5x10xi1>, vector<5x10xf32>
    %47 = tpu.concatenate %38, %46 in 0 : vector<5x10xf32>, vector<5x10xf32> -> vector<10x10xf32>
    %48 = tpu.concatenate %47, %47, %47, %47 in 0 : vector<10x10xf32>, vector<10x10xf32>, vector<10x10xf32>, vector<10x10xf32> -> vector<40x10xf32>
    %49 = tpu.iota {dimensions = array<i32: 1>} : vector<2x32xi32>
    %c0_i32_8 = arith.constant 0 : i32
    %50 = vector.broadcast %c0_i32_8 : i32 to vector<2x32xi32>
    %51 = arith.cmpi sge, %49, %50 : vector<2x32xi32>
    %c8_i32_9 = arith.constant 8 : i32
    %52 = vector.broadcast %c8_i32_9 : i32 to vector<2x32xi32>
    %53 = arith.cmpi slt, %49, %52 : vector<2x32xi32>
    %54 = arith.andi %51, %53 : vector<2x32xi1>
    %55 = arith.extui %54 : vector<2x32xi1> to vector<2x32xi32>
    %56 = arith.sitofp %55 : vector<2x32xi32> to vector<2x32xf32>
    %c8_i32_10 = arith.constant 8 : i32
    %57 = vector.broadcast %c8_i32_10 : i32 to vector<2x32xi32>
    %58 = arith.cmpi sge, %49, %57 : vector<2x32xi32>
    %c16_i32_11 = arith.constant 16 : i32
    %59 = vector.broadcast %c16_i32_11 : i32 to vector<2x32xi32>
    %60 = arith.cmpi slt, %49, %59 : vector<2x32xi32>
    %61 = arith.andi %58, %60 : vector<2x32xi1>
    %62 = arith.extui %61 : vector<2x32xi1> to vector<2x32xi32>
    %63 = arith.sitofp %62 : vector<2x32xi32> to vector<2x32xf32>
    %c16_i32_12 = arith.constant 16 : i32
    %64 = vector.broadcast %c16_i32_12 : i32 to vector<2x32xi32>
    %65 = arith.cmpi sge, %49, %64 : vector<2x32xi32>
    %c24_i32_13 = arith.constant 24 : i32
    %66 = vector.broadcast %c24_i32_13 : i32 to vector<2x32xi32>
    %67 = arith.cmpi slt, %49, %66 : vector<2x32xi32>
    %68 = arith.andi %65, %67 : vector<2x32xi1>
    %69 = arith.extui %68 : vector<2x32xi1> to vector<2x32xi32>
    %70 = arith.sitofp %69 : vector<2x32xi32> to vector<2x32xf32>
    %c24_i32_14 = arith.constant 24 : i32
    %71 = vector.broadcast %c24_i32_14 : i32 to vector<2x32xi32>
    %72 = arith.cmpi sge, %49, %71 : vector<2x32xi32>
    %c32_i32_15 = arith.constant 32 : i32
    %73 = vector.broadcast %c32_i32_15 : i32 to vector<2x32xi32>
    %74 = arith.cmpi slt, %49, %73 : vector<2x32xi32>
    %75 = arith.andi %72, %74 : vector<2x32xi1>
    %76 = arith.extui %75 : vector<2x32xi1> to vector<2x32xi32>
    %77 = arith.sitofp %76 : vector<2x32xi32> to vector<2x32xf32>
    %78 = tpu.concatenate %56, %63, %70, %77 in 0 : vector<2x32xf32>, vector<2x32xf32>, vector<2x32xf32>, vector<2x32xf32> -> vector<8x32xf32>
    %79 = tpu.iota {dimensions = array<i32: 1>} : vector<1x10xi32>
    %c0_i32_16 = arith.constant 0 : i32
    %80 = vector.broadcast %c0_i32_16 : i32 to vector<1x10xi32>
    %81 = arith.cmpi sge, %79, %80 : vector<1x10xi32>
    %c5_i32_17 = arith.constant 5 : i32
    %82 = vector.broadcast %c5_i32_17 : i32 to vector<1x10xi32>
    %83 = arith.cmpi slt, %79, %82 : vector<1x10xi32>
    %84 = arith.andi %81, %83 : vector<1x10xi1>
    %cst_18 = arith.constant 0.000000e+00 : f32
    %cst_19 = arith.constant -1.000000e+30 : f32
    %85 = vector.broadcast %cst_18 : f32 to vector<1x10xf32>
    %86 = vector.broadcast %cst_19 : f32 to vector<1x10xf32>
    %87 = arith.select %84, %85, %86 : vector<1x10xi1>, vector<1x10xf32>
    %c5_i32_20 = arith.constant 5 : i32
    %88 = vector.broadcast %c5_i32_20 : i32 to vector<1x10xi32>
    %89 = arith.cmpi sge, %79, %88 : vector<1x10xi32>
    %c10_i32_21 = arith.constant 10 : i32
    %90 = vector.broadcast %c10_i32_21 : i32 to vector<1x10xi32>
    %91 = arith.cmpi slt, %79, %90 : vector<1x10xi32>
    %92 = arith.andi %89, %91 : vector<1x10xi1>
    %cst_22 = arith.constant 0.000000e+00 : f32
    %cst_23 = arith.constant -1.000000e+30 : f32
    %93 = vector.broadcast %cst_22 : f32 to vector<1x10xf32>
    %94 = vector.broadcast %cst_23 : f32 to vector<1x10xf32>
    %95 = arith.select %92, %93, %94 : vector<1x10xi1>, vector<1x10xf32>
    %96 = tpu.concatenate %87, %95 in 0 : vector<1x10xf32>, vector<1x10xf32> -> vector<2x10xf32>
    %97 = tpu.concatenate %96, %96, %96, %96 in 0 : vector<2x10xf32>, vector<2x10xf32>, vector<2x10xf32>, vector<2x10xf32> -> vector<8x10xf32>
    %c0 = arith.constant 0 : index
    %c0_24 = arith.constant 0 : index
    %98 = vector.load %arg4[%c0, %c0_24] : memref<28x96xf32, #tpu.memory_space<vmem>>, vector<5x32xf32>
    %99 = tpu.concatenate %98, %98 in 0 : vector<5x32xf32>, vector<5x32xf32> -> vector<10x32xf32>
    %c0_25 = arith.constant 0 : index
    %c0_26 = arith.constant 0 : index
    %100 = vector.load %arg0[%c0_25, %c0_26] : memref<10x192xf32, #tpu.memory_space<vmem>>, vector<10x192xf32>
    %c0_27 = arith.constant 0 : index
    %c0_28 = arith.constant 0 : index
    %101 = vector.load %arg1[%c0_27, %c0_28] : memref<448x32xbf16, #tpu.memory_space<vmem>>, vector<192x32xbf16>
    %102 = arith.truncf %100 : vector<10x192xf32> to vector<10x192xbf16>
    %cst_29 = arith.constant dense<0.000000e+00> : vector<10x32xf32>
    %103 = tpu.matmul %102, %101, %cst_29 {dimension_numbers = #tpu.dot_dimension_numbers<[1], [0], [0], [1], [0, 0, 1, 1], [], []>} : vector<10x192xbf16>, vector<192x32xbf16>, vector<10x32xf32> -> vector<10x32xf32>
    %c5 = arith.constant 5 : index
    %c0_30 = arith.constant 0 : index
    %104 = vector.load %arg4[%c5, %c0_30] : memref<28x96xf32, #tpu.memory_space<vmem>>, vector<1x32xf32>
    %105 = vector.broadcast %104 : vector<1x32xf32> to vector<10x32xf32>
    %106 = arith.addf %103, %105 : vector<10x32xf32>
    %107 = arith.addf %106, %99 : vector<10x32xf32>
    %c6 = arith.constant 6 : index
    %c0_31 = arith.constant 0 : index
    %108 = vector.load %arg4[%c6, %c0_31] : memref<28x96xf32, #tpu.memory_space<vmem>>, vector<1x32xf32>
    %c7 = arith.constant 7 : index
    %c0_32 = arith.constant 0 : index
    %109 = vector.load %arg4[%c7, %c0_32] : memref<28x96xf32, #tpu.memory_space<vmem>>, vector<1x32xf32>
    %cst_33 = arith.constant dense<0.000000e+00> : vector<10xf32>
    %110 = vector.multi_reduction <add>, %107, %cst_33 [1] : vector<10x32xf32> to vector<10xf32>
    %111 = vector.shape_cast %110 : vector<10xf32> to vector<10x1xf32>
    %cst_34 = arith.constant 3.200000e+01 : f32
    %112 = vector.broadcast %cst_34 : f32 to vector<10x1xf32>
    %113 = arith.divf %111, %112 : vector<10x1xf32>
    %114 = vector.broadcast %113 : vector<10x1xf32> to vector<10x32xf32>
    %115 = arith.subf %107, %114 : vector<10x32xf32>
    %116 = arith.mulf %115, %115 : vector<10x32xf32>
    %cst_35 = arith.constant dense<0.000000e+00> : vector<10xf32>
    %117 = vector.multi_reduction <add>, %116, %cst_35 [1] : vector<10x32xf32> to vector<10xf32>
    %118 = vector.shape_cast %117 : vector<10xf32> to vector<10x1xf32>
    %cst_36 = arith.constant 3.200000e+01 : f32
    %119 = vector.broadcast %cst_36 : f32 to vector<10x1xf32>
    %120 = arith.divf %118, %119 : vector<10x1xf32>
    %cst_37 = arith.constant 9.99999974E-6 : f32
    %121 = vector.broadcast %cst_37 : f32 to vector<10x1xf32>
    %122 = arith.addf %120, %121 : vector<10x1xf32>
    %123 = math.rsqrt %122 : vector<10x1xf32>
    %124 = vector.broadcast %123 : vector<10x1xf32> to vector<10x32xf32>
    %125 = arith.mulf %115, %124 : vector<10x32xf32>
    %126 = vector.broadcast %108 : vector<1x32xf32> to vector<10x32xf32>
    %127 = arith.mulf %125, %126 : vector<10x32xf32>
    %128 = vector.broadcast %109 : vector<1x32xf32> to vector<10x32xf32>
    %129 = arith.addf %127, %128 : vector<10x32xf32>
    %c0_38 = arith.constant 0 : index
    %c0_39 = arith.constant 0 : index
    %130 = vector.load %arg3[%c0_38, %c0_39] : memref<64x96xbf16, #tpu.memory_space<vmem>>, vector<32x96xbf16>
    %131 = arith.truncf %129 : vector<10x32xf32> to vector<10x32xbf16>
    %cst_40 = arith.constant dense<0.000000e+00> : vector<10x96xf32>
    %132 = tpu.matmul %131, %130, %cst_40 {dimension_numbers = #tpu.dot_dimension_numbers<[1], [0], [0], [1], [0, 0, 1, 1], [], []>} : vector<10x32xbf16>, vector<32x96xbf16>, vector<10x96xf32> -> vector<10x96xf32>
    %c8 = arith.constant 8 : index
    %c0_41 = arith.constant 0 : index
    %133 = vector.load %arg4[%c8, %c0_41] : memref<28x96xf32, #tpu.memory_space<vmem>>, vector<1x96xf32>
    %134 = vector.broadcast %133 : vector<1x96xf32> to vector<10x96xf32>
    %135 = arith.addf %132, %134 : vector<10x96xf32>
    %136 = vector.extract_strided_slice %135 {offsets = [0, 0], sizes = [10, 32], strides = [1, 1]} : vector<10x96xf32> to vector<10x32xf32>
    %137 = vector.extract_strided_slice %135 {offsets = [0, 32], sizes = [10, 32], strides = [1, 1]} : vector<10x96xf32> to vector<10x32xf32>
    %138 = vector.extract_strided_slice %135 {offsets = [0, 64], sizes = [10, 32], strides = [1, 1]} : vector<10x96xf32> to vector<10x32xf32>
    %139 = tpu.concatenate %136, %136, %136, %136 in 0 : vector<10x32xf32>, vector<10x32xf32>, vector<10x32xf32>, vector<10x32xf32> -> vector<40x32xf32>
    %140 = arith.mulf %139, %29 : vector<40x32xf32>
    %141 = arith.truncf %140 : vector<40x32xf32> to vector<40x32xbf16>
    %142 = arith.truncf %137 : vector<10x32xf32> to vector<10x32xbf16>
    %cst_42 = arith.constant dense<0.000000e+00> : vector<40x10xf32>
    %143 = tpu.matmul %141, %142, %cst_42 {dimension_numbers = #tpu.dot_dimension_numbers<[1], [1], [0], [0], [0, 0, 1, 0], [], []>} : vector<40x32xbf16>, vector<10x32xbf16>, vector<40x10xf32> -> vector<40x10xf32>
    %cst_43 = arith.constant 0.353553385 : f32
    %144 = vector.broadcast %cst_43 : f32 to vector<40x10xf32>
    %145 = arith.mulf %143, %144 : vector<40x10xf32>
    %146 = arith.addf %145, %48 : vector<40x10xf32>
    %cst_44 = arith.constant dense<0xFF800000> : vector<40xf32>
    %147 = vector.multi_reduction <maximumf>, %146, %cst_44 [1] : vector<40x10xf32> to vector<40xf32>
    %148 = vector.shape_cast %147 : vector<40xf32> to vector<40x1xf32>
    %149 = vector.broadcast %148 : vector<40x1xf32> to vector<40x10xf32>
    %150 = arith.subf %146, %149 : vector<40x10xf32>
    %151 = math.exp %150 : vector<40x10xf32>
    %cst_45 = arith.constant dense<0.000000e+00> : vector<40xf32>
    %152 = vector.multi_reduction <add>, %151, %cst_45 [1] : vector<40x10xf32> to vector<40xf32>
    %153 = vector.shape_cast %152 : vector<40xf32> to vector<40x1xf32>
    %154 = vector.broadcast %153 : vector<40x1xf32> to vector<40x10xf32>
    %155 = arith.divf %151, %154 : vector<40x10xf32>
    %156 = arith.truncf %155 : vector<40x10xf32> to vector<40x10xbf16>
    %157 = arith.truncf %138 : vector<10x32xf32> to vector<10x32xbf16>
    %cst_46 = arith.constant dense<0.000000e+00> : vector<40x32xf32>
    %158 = tpu.matmul %156, %157, %cst_46 {dimension_numbers = #tpu.dot_dimension_numbers<[1], [0], [0], [1], [0, 0, 1, 1], [], []>} : vector<40x10xbf16>, vector<10x32xbf16>, vector<40x32xf32> -> vector<40x32xf32>
    %159 = arith.mulf %158, %29 : vector<40x32xf32>
    %160 = vector.extract_strided_slice %159 {offsets = [0, 0], sizes = [10, 32], strides = [1, 1]} : vector<40x32xf32> to vector<10x32xf32>
    %161 = vector.extract_strided_slice %159 {offsets = [10, 0], sizes = [10, 32], strides = [1, 1]} : vector<40x32xf32> to vector<10x32xf32>
    %162 = arith.addf %160, %161 : vector<10x32xf32>
    %163 = vector.extract_strided_slice %159 {offsets = [20, 0], sizes = [10, 32], strides = [1, 1]} : vector<40x32xf32> to vector<10x32xf32>
    %164 = arith.addf %162, %163 : vector<10x32xf32>
    %165 = vector.extract_strided_slice %159 {offsets = [30, 0], sizes = [10, 32], strides = [1, 1]} : vector<40x32xf32> to vector<10x32xf32>
    %166 = arith.addf %164, %165 : vector<10x32xf32>
    %c192 = arith.constant 192 : index
    %c0_47 = arith.constant 0 : index
    %167 = vector.load %arg1[%c192, %c0_47] : memref<448x32xbf16, #tpu.memory_space<vmem>>, vector<32x32xbf16>
    %168 = arith.truncf %166 : vector<10x32xf32> to vector<10x32xbf16>
    %cst_48 = arith.constant dense<0.000000e+00> : vector<10x32xf32>
    %169 = tpu.matmul %168, %167, %cst_48 {dimension_numbers = #tpu.dot_dimension_numbers<[1], [0], [0], [1], [0, 0, 1, 1], [], []>} : vector<10x32xbf16>, vector<32x32xbf16>, vector<10x32xf32> -> vector<10x32xf32>
    %170 = arith.addf %107, %169 : vector<10x32xf32>
    %c9 = arith.constant 9 : index
    %c0_49 = arith.constant 0 : index
    %171 = vector.load %arg4[%c9, %c0_49] : memref<28x96xf32, #tpu.memory_space<vmem>>, vector<1x32xf32>
    %172 = vector.broadcast %171 : vector<1x32xf32> to vector<10x32xf32>
    %173 = arith.addf %170, %172 : vector<10x32xf32>
    %c10 = arith.constant 10 : index
    %c0_50 = arith.constant 0 : index
    %174 = vector.load %arg4[%c10, %c0_50] : memref<28x96xf32, #tpu.memory_space<vmem>>, vector<1x32xf32>
    %c11 = arith.constant 11 : index
    %c0_51 = arith.constant 0 : index
    %175 = vector.load %arg4[%c11, %c0_51] : memref<28x96xf32, #tpu.memory_space<vmem>>, vector<1x32xf32>
    %cst_52 = arith.constant dense<0.000000e+00> : vector<10xf32>
    %176 = vector.multi_reduction <add>, %173, %cst_52 [1] : vector<10x32xf32> to vector<10xf32>
    %177 = vector.shape_cast %176 : vector<10xf32> to vector<10x1xf32>
    %cst_53 = arith.constant 3.200000e+01 : f32
    %178 = vector.broadcast %cst_53 : f32 to vector<10x1xf32>
    %179 = arith.divf %177, %178 : vector<10x1xf32>
    %180 = vector.broadcast %179 : vector<10x1xf32> to vector<10x32xf32>
    %181 = arith.subf %173, %180 : vector<10x32xf32>
    %182 = arith.mulf %181, %181 : vector<10x32xf32>
    %cst_54 = arith.constant dense<0.000000e+00> : vector<10xf32>
    %183 = vector.multi_reduction <add>, %182, %cst_54 [1] : vector<10x32xf32> to vector<10xf32>
    %184 = vector.shape_cast %183 : vector<10xf32> to vector<10x1xf32>
    %cst_55 = arith.constant 3.200000e+01 : f32
    %185 = vector.broadcast %cst_55 : f32 to vector<10x1xf32>
    %186 = arith.divf %184, %185 : vector<10x1xf32>
    %cst_56 = arith.constant 9.99999974E-6 : f32
    %187 = vector.broadcast %cst_56 : f32 to vector<10x1xf32>
    %188 = arith.addf %186, %187 : vector<10x1xf32>
    %189 = math.rsqrt %188 : vector<10x1xf32>
    %190 = vector.broadcast %189 : vector<10x1xf32> to vector<10x32xf32>
    %191 = arith.mulf %181, %190 : vector<10x32xf32>
    %192 = vector.broadcast %174 : vector<1x32xf32> to vector<10x32xf32>
    %193 = arith.mulf %191, %192 : vector<10x32xf32>
    %194 = vector.broadcast %175 : vector<1x32xf32> to vector<10x32xf32>
    %195 = arith.addf %193, %194 : vector<10x32xf32>
    %c0_57 = arith.constant 0 : index
    %c0_58 = arith.constant 0 : index
    %196 = vector.load %arg2[%c0_57, %c0_58] : memref<96x64xbf16, #tpu.memory_space<vmem>>, vector<32x64xbf16>
    %197 = arith.truncf %195 : vector<10x32xf32> to vector<10x32xbf16>
    %cst_59 = arith.constant dense<0.000000e+00> : vector<10x64xf32>
    %198 = tpu.matmul %197, %196, %cst_59 {dimension_numbers = #tpu.dot_dimension_numbers<[1], [0], [0], [1], [0, 0, 1, 1], [], []>} : vector<10x32xbf16>, vector<32x64xbf16>, vector<10x64xf32> -> vector<10x64xf32>
    %c12 = arith.constant 12 : index
    %c0_60 = arith.constant 0 : index
    %199 = vector.load %arg4[%c12, %c0_60] : memref<28x96xf32, #tpu.memory_space<vmem>>, vector<1x64xf32>
    %200 = vector.broadcast %199 : vector<1x64xf32> to vector<10x64xf32>
    %201 = arith.addf %198, %200 : vector<10x64xf32>
    %cst_61 = arith.constant 5.000000e-01 : f32
    %202 = vector.broadcast %cst_61 : f32 to vector<10x64xf32>
    %203 = arith.mulf %202, %201 : vector<10x64xf32>
    %cst_62 = arith.constant 0.707106769 : f32
    %204 = vector.broadcast %cst_62 : f32 to vector<10x64xf32>
    %205 = arith.mulf %201, %204 : vector<10x64xf32>
    %cst_63 = arith.constant 0.000000e+00 : f32
    %206 = vector.broadcast %cst_63 : f32 to vector<10x64xf32>
    %207 = arith.cmpf oge, %205, %206 : vector<10x64xf32>
    %cst_64 = arith.constant 1.000000e+00 : f32
    %cst_65 = arith.constant -1.000000e+00 : f32
    %208 = vector.broadcast %cst_64 : f32 to vector<10x64xf32>
    %209 = vector.broadcast %cst_65 : f32 to vector<10x64xf32>
    %210 = arith.select %207, %208, %209 : vector<10x64xi1>, vector<10x64xf32>
    %211 = math.absf %205 : vector<10x64xf32>
    %cst_66 = arith.constant 0.327591091 : f32
    %212 = vector.broadcast %cst_66 : f32 to vector<10x64xf32>
    %213 = arith.mulf %212, %211 : vector<10x64xf32>
    %cst_67 = arith.constant 1.000000e+00 : f32
    %214 = vector.broadcast %cst_67 : f32 to vector<10x64xf32>
    %215 = arith.addf %214, %213 : vector<10x64xf32>
    %cst_68 = arith.constant 1.000000e+00 : f32
    %216 = vector.broadcast %cst_68 : f32 to vector<10x64xf32>
    %217 = arith.divf %216, %215 : vector<10x64xf32>
    %cst_69 = arith.constant 1.06140542 : f32
    %218 = vector.broadcast %cst_69 : f32 to vector<10x64xf32>
    %219 = arith.mulf %218, %217 : vector<10x64xf32>
    %cst_70 = arith.constant -1.45315206 : f32
    %220 = vector.broadcast %cst_70 : f32 to vector<10x64xf32>
    %221 = arith.addf %219, %220 : vector<10x64xf32>
    %222 = arith.mulf %221, %217 : vector<10x64xf32>
    %cst_71 = arith.constant 1.42141378 : f32
    %223 = vector.broadcast %cst_71 : f32 to vector<10x64xf32>
    %224 = arith.addf %222, %223 : vector<10x64xf32>
    %225 = arith.mulf %224, %217 : vector<10x64xf32>
    %cst_72 = arith.constant -0.284496725 : f32
    %226 = vector.broadcast %cst_72 : f32 to vector<10x64xf32>
    %227 = arith.addf %225, %226 : vector<10x64xf32>
    %228 = arith.mulf %227, %217 : vector<10x64xf32>
    %cst_73 = arith.constant 0.254829586 : f32
    %229 = vector.broadcast %cst_73 : f32 to vector<10x64xf32>
    %230 = arith.addf %228, %229 : vector<10x64xf32>
    %231 = arith.mulf %230, %217 : vector<10x64xf32>
    %cst_74 = arith.constant 0.000000e+00 : f32
    %232 = vector.broadcast %cst_74 : f32 to vector<10x64xf32>
    %233 = arith.subf %232, %211 : vector<10x64xf32>
    %234 = arith.mulf %233, %211 : vector<10x64xf32>
    %235 = math.exp %234 : vector<10x64xf32>
    %236 = arith.mulf %231, %235 : vector<10x64xf32>
    %cst_75 = arith.constant 1.000000e+00 : f32
    %237 = vector.broadcast %cst_75 : f32 to vector<10x64xf32>
    %238 = arith.subf %237, %236 : vector<10x64xf32>
    %239 = arith.mulf %210, %238 : vector<10x64xf32>
    %cst_76 = arith.constant 1.000000e+00 : f32
    %240 = vector.broadcast %cst_76 : f32 to vector<10x64xf32>
    %241 = arith.addf %240, %239 : vector<10x64xf32>
    %242 = arith.mulf %203, %241 : vector<10x64xf32>
    %c256 = arith.constant 256 : index
    %c0_77 = arith.constant 0 : index
    %243 = vector.load %arg1[%c256, %c0_77] : memref<448x32xbf16, #tpu.memory_space<vmem>>, vector<64x32xbf16>
    %244 = arith.truncf %242 : vector<10x64xf32> to vector<10x64xbf16>
    %cst_78 = arith.constant dense<0.000000e+00> : vector<10x32xf32>
    %245 = tpu.matmul %244, %243, %cst_78 {dimension_numbers = #tpu.dot_dimension_numbers<[1], [0], [0], [1], [0, 0, 1, 1], [], []>} : vector<10x64xbf16>, vector<64x32xbf16>, vector<10x32xf32> -> vector<10x32xf32>
    %246 = arith.addf %173, %245 : vector<10x32xf32>
    %c13 = arith.constant 13 : index
    %c0_79 = arith.constant 0 : index
    %247 = vector.load %arg4[%c13, %c0_79] : memref<28x96xf32, #tpu.memory_space<vmem>>, vector<1x32xf32>
    %248 = vector.broadcast %247 : vector<1x32xf32> to vector<10x32xf32>
    %249 = arith.addf %246, %248 : vector<10x32xf32>
    %c14 = arith.constant 14 : index
    %c0_80 = arith.constant 0 : index
    %250 = vector.load %arg4[%c14, %c0_80] : memref<28x96xf32, #tpu.memory_space<vmem>>, vector<1x32xf32>
    %c15 = arith.constant 15 : index
    %c0_81 = arith.constant 0 : index
    %251 = vector.load %arg4[%c15, %c0_81] : memref<28x96xf32, #tpu.memory_space<vmem>>, vector<1x32xf32>
    %cst_82 = arith.constant dense<0.000000e+00> : vector<10xf32>
    %252 = vector.multi_reduction <add>, %249, %cst_82 [1] : vector<10x32xf32> to vector<10xf32>
    %253 = vector.shape_cast %252 : vector<10xf32> to vector<10x1xf32>
    %cst_83 = arith.constant 3.200000e+01 : f32
    %254 = vector.broadcast %cst_83 : f32 to vector<10x1xf32>
    %255 = arith.divf %253, %254 : vector<10x1xf32>
    %256 = vector.broadcast %255 : vector<10x1xf32> to vector<10x32xf32>
    %257 = arith.subf %249, %256 : vector<10x32xf32>
    %258 = arith.mulf %257, %257 : vector<10x32xf32>
    %cst_84 = arith.constant dense<0.000000e+00> : vector<10xf32>
    %259 = vector.multi_reduction <add>, %258, %cst_84 [1] : vector<10x32xf32> to vector<10xf32>
    %260 = vector.shape_cast %259 : vector<10xf32> to vector<10x1xf32>
    %cst_85 = arith.constant 3.200000e+01 : f32
    %261 = vector.broadcast %cst_85 : f32 to vector<10x1xf32>
    %262 = arith.divf %260, %261 : vector<10x1xf32>
    %cst_86 = arith.constant 9.99999974E-6 : f32
    %263 = vector.broadcast %cst_86 : f32 to vector<10x1xf32>
    %264 = arith.addf %262, %263 : vector<10x1xf32>
    %265 = math.rsqrt %264 : vector<10x1xf32>
    %266 = vector.broadcast %265 : vector<10x1xf32> to vector<10x32xf32>
    %267 = arith.mulf %257, %266 : vector<10x32xf32>
    %268 = vector.broadcast %250 : vector<1x32xf32> to vector<10x32xf32>
    %269 = arith.mulf %267, %268 : vector<10x32xf32>
    %270 = vector.broadcast %251 : vector<1x32xf32> to vector<10x32xf32>
    %271 = arith.addf %269, %270 : vector<10x32xf32>
    %c32 = arith.constant 32 : index
    %c0_87 = arith.constant 0 : index
    %272 = vector.load %arg3[%c32, %c0_87] : memref<64x96xbf16, #tpu.memory_space<vmem>>, vector<32x96xbf16>
    %273 = arith.truncf %271 : vector<10x32xf32> to vector<10x32xbf16>
    %cst_88 = arith.constant dense<0.000000e+00> : vector<10x96xf32>
    %274 = tpu.matmul %273, %272, %cst_88 {dimension_numbers = #tpu.dot_dimension_numbers<[1], [0], [0], [1], [0, 0, 1, 1], [], []>} : vector<10x32xbf16>, vector<32x96xbf16>, vector<10x96xf32> -> vector<10x96xf32>
    %c16 = arith.constant 16 : index
    %c0_89 = arith.constant 0 : index
    %275 = vector.load %arg4[%c16, %c0_89] : memref<28x96xf32, #tpu.memory_space<vmem>>, vector<1x96xf32>
    %276 = vector.broadcast %275 : vector<1x96xf32> to vector<10x96xf32>
    %277 = arith.addf %274, %276 : vector<10x96xf32>
    %278 = vector.extract_strided_slice %277 {offsets = [0, 0], sizes = [10, 32], strides = [1, 1]} : vector<10x96xf32> to vector<10x32xf32>
    %279 = vector.extract_strided_slice %277 {offsets = [0, 32], sizes = [10, 32], strides = [1, 1]} : vector<10x96xf32> to vector<10x32xf32>
    %280 = vector.extract_strided_slice %277 {offsets = [0, 64], sizes = [10, 32], strides = [1, 1]} : vector<10x96xf32> to vector<10x32xf32>
    %281 = tpu.concatenate %278, %278, %278, %278 in 0 : vector<10x32xf32>, vector<10x32xf32>, vector<10x32xf32>, vector<10x32xf32> -> vector<40x32xf32>
    %282 = arith.mulf %281, %29 : vector<40x32xf32>
    %283 = arith.truncf %282 : vector<40x32xf32> to vector<40x32xbf16>
    %284 = arith.truncf %279 : vector<10x32xf32> to vector<10x32xbf16>
    %cst_90 = arith.constant dense<0.000000e+00> : vector<40x10xf32>
    %285 = tpu.matmul %283, %284, %cst_90 {dimension_numbers = #tpu.dot_dimension_numbers<[1], [1], [0], [0], [0, 0, 1, 0], [], []>} : vector<40x32xbf16>, vector<10x32xbf16>, vector<40x10xf32> -> vector<40x10xf32>
    %cst_91 = arith.constant 0.353553385 : f32
    %286 = vector.broadcast %cst_91 : f32 to vector<40x10xf32>
    %287 = arith.mulf %285, %286 : vector<40x10xf32>
    %288 = arith.addf %287, %48 : vector<40x10xf32>
    %cst_92 = arith.constant dense<0xFF800000> : vector<40xf32>
    %289 = vector.multi_reduction <maximumf>, %288, %cst_92 [1] : vector<40x10xf32> to vector<40xf32>
    %290 = vector.shape_cast %289 : vector<40xf32> to vector<40x1xf32>
    %291 = vector.broadcast %290 : vector<40x1xf32> to vector<40x10xf32>
    %292 = arith.subf %288, %291 : vector<40x10xf32>
    %293 = math.exp %292 : vector<40x10xf32>
    %cst_93 = arith.constant dense<0.000000e+00> : vector<40xf32>
    %294 = vector.multi_reduction <add>, %293, %cst_93 [1] : vector<40x10xf32> to vector<40xf32>
    %295 = vector.shape_cast %294 : vector<40xf32> to vector<40x1xf32>
    %296 = vector.broadcast %295 : vector<40x1xf32> to vector<40x10xf32>
    %297 = arith.divf %293, %296 : vector<40x10xf32>
    %298 = arith.truncf %297 : vector<40x10xf32> to vector<40x10xbf16>
    %299 = arith.truncf %280 : vector<10x32xf32> to vector<10x32xbf16>
    %cst_94 = arith.constant dense<0.000000e+00> : vector<40x32xf32>
    %300 = tpu.matmul %298, %299, %cst_94 {dimension_numbers = #tpu.dot_dimension_numbers<[1], [0], [0], [1], [0, 0, 1, 1], [], []>} : vector<40x10xbf16>, vector<10x32xbf16>, vector<40x32xf32> -> vector<40x32xf32>
    %301 = arith.mulf %300, %29 : vector<40x32xf32>
    %302 = vector.extract_strided_slice %301 {offsets = [0, 0], sizes = [10, 32], strides = [1, 1]} : vector<40x32xf32> to vector<10x32xf32>
    %303 = vector.extract_strided_slice %301 {offsets = [10, 0], sizes = [10, 32], strides = [1, 1]} : vector<40x32xf32> to vector<10x32xf32>
    %304 = arith.addf %302, %303 : vector<10x32xf32>
    %305 = vector.extract_strided_slice %301 {offsets = [20, 0], sizes = [10, 32], strides = [1, 1]} : vector<40x32xf32> to vector<10x32xf32>
    %306 = arith.addf %304, %305 : vector<10x32xf32>
    %307 = vector.extract_strided_slice %301 {offsets = [30, 0], sizes = [10, 32], strides = [1, 1]} : vector<40x32xf32> to vector<10x32xf32>
    %308 = arith.addf %306, %307 : vector<10x32xf32>
    %c224 = arith.constant 224 : index
    %c0_95 = arith.constant 0 : index
    %309 = vector.load %arg1[%c224, %c0_95] : memref<448x32xbf16, #tpu.memory_space<vmem>>, vector<32x32xbf16>
    %310 = arith.truncf %308 : vector<10x32xf32> to vector<10x32xbf16>
    %cst_96 = arith.constant dense<0.000000e+00> : vector<10x32xf32>
    %311 = tpu.matmul %310, %309, %cst_96 {dimension_numbers = #tpu.dot_dimension_numbers<[1], [0], [0], [1], [0, 0, 1, 1], [], []>} : vector<10x32xbf16>, vector<32x32xbf16>, vector<10x32xf32> -> vector<10x32xf32>
    %312 = arith.addf %249, %311 : vector<10x32xf32>
    %c17 = arith.constant 17 : index
    %c0_97 = arith.constant 0 : index
    %313 = vector.load %arg4[%c17, %c0_97] : memref<28x96xf32, #tpu.memory_space<vmem>>, vector<1x32xf32>
    %314 = vector.broadcast %313 : vector<1x32xf32> to vector<10x32xf32>
    %315 = arith.addf %312, %314 : vector<10x32xf32>
    %c18 = arith.constant 18 : index
    %c0_98 = arith.constant 0 : index
    %316 = vector.load %arg4[%c18, %c0_98] : memref<28x96xf32, #tpu.memory_space<vmem>>, vector<1x32xf32>
    %c19 = arith.constant 19 : index
    %c0_99 = arith.constant 0 : index
    %317 = vector.load %arg4[%c19, %c0_99] : memref<28x96xf32, #tpu.memory_space<vmem>>, vector<1x32xf32>
    %cst_100 = arith.constant dense<0.000000e+00> : vector<10xf32>
    %318 = vector.multi_reduction <add>, %315, %cst_100 [1] : vector<10x32xf32> to vector<10xf32>
    %319 = vector.shape_cast %318 : vector<10xf32> to vector<10x1xf32>
    %cst_101 = arith.constant 3.200000e+01 : f32
    %320 = vector.broadcast %cst_101 : f32 to vector<10x1xf32>
    %321 = arith.divf %319, %320 : vector<10x1xf32>
    %322 = vector.broadcast %321 : vector<10x1xf32> to vector<10x32xf32>
    %323 = arith.subf %315, %322 : vector<10x32xf32>
    %324 = arith.mulf %323, %323 : vector<10x32xf32>
    %cst_102 = arith.constant dense<0.000000e+00> : vector<10xf32>
    %325 = vector.multi_reduction <add>, %324, %cst_102 [1] : vector<10x32xf32> to vector<10xf32>
    %326 = vector.shape_cast %325 : vector<10xf32> to vector<10x1xf32>
    %cst_103 = arith.constant 3.200000e+01 : f32
    %327 = vector.broadcast %cst_103 : f32 to vector<10x1xf32>
    %328 = arith.divf %326, %327 : vector<10x1xf32>
    %cst_104 = arith.constant 9.99999974E-6 : f32
    %329 = vector.broadcast %cst_104 : f32 to vector<10x1xf32>
    %330 = arith.addf %328, %329 : vector<10x1xf32>
    %331 = math.rsqrt %330 : vector<10x1xf32>
    %332 = vector.broadcast %331 : vector<10x1xf32> to vector<10x32xf32>
    %333 = arith.mulf %323, %332 : vector<10x32xf32>
    %334 = vector.broadcast %316 : vector<1x32xf32> to vector<10x32xf32>
    %335 = arith.mulf %333, %334 : vector<10x32xf32>
    %336 = vector.broadcast %317 : vector<1x32xf32> to vector<10x32xf32>
    %337 = arith.addf %335, %336 : vector<10x32xf32>
    %c32_105 = arith.constant 32 : index
    %c0_106 = arith.constant 0 : index
    %338 = vector.load %arg2[%c32_105, %c0_106] : memref<96x64xbf16, #tpu.memory_space<vmem>>, vector<32x64xbf16>
    %339 = arith.truncf %337 : vector<10x32xf32> to vector<10x32xbf16>
    %cst_107 = arith.constant dense<0.000000e+00> : vector<10x64xf32>
    %340 = tpu.matmul %339, %338, %cst_107 {dimension_numbers = #tpu.dot_dimension_numbers<[1], [0], [0], [1], [0, 0, 1, 1], [], []>} : vector<10x32xbf16>, vector<32x64xbf16>, vector<10x64xf32> -> vector<10x64xf32>
    %c20 = arith.constant 20 : index
    %c0_108 = arith.constant 0 : index
    %341 = vector.load %arg4[%c20, %c0_108] : memref<28x96xf32, #tpu.memory_space<vmem>>, vector<1x64xf32>
    %342 = vector.broadcast %341 : vector<1x64xf32> to vector<10x64xf32>
    %343 = arith.addf %340, %342 : vector<10x64xf32>
    %cst_109 = arith.constant 5.000000e-01 : f32
    %344 = vector.broadcast %cst_109 : f32 to vector<10x64xf32>
    %345 = arith.mulf %344, %343 : vector<10x64xf32>
    %cst_110 = arith.constant 0.707106769 : f32
    %346 = vector.broadcast %cst_110 : f32 to vector<10x64xf32>
    %347 = arith.mulf %343, %346 : vector<10x64xf32>
    %cst_111 = arith.constant 0.000000e+00 : f32
    %348 = vector.broadcast %cst_111 : f32 to vector<10x64xf32>
    %349 = arith.cmpf oge, %347, %348 : vector<10x64xf32>
    %cst_112 = arith.constant 1.000000e+00 : f32
    %cst_113 = arith.constant -1.000000e+00 : f32
    %350 = vector.broadcast %cst_112 : f32 to vector<10x64xf32>
    %351 = vector.broadcast %cst_113 : f32 to vector<10x64xf32>
    %352 = arith.select %349, %350, %351 : vector<10x64xi1>, vector<10x64xf32>
    %353 = math.absf %347 : vector<10x64xf32>
    %cst_114 = arith.constant 0.327591091 : f32
    %354 = vector.broadcast %cst_114 : f32 to vector<10x64xf32>
    %355 = arith.mulf %354, %353 : vector<10x64xf32>
    %cst_115 = arith.constant 1.000000e+00 : f32
    %356 = vector.broadcast %cst_115 : f32 to vector<10x64xf32>
    %357 = arith.addf %356, %355 : vector<10x64xf32>
    %cst_116 = arith.constant 1.000000e+00 : f32
    %358 = vector.broadcast %cst_116 : f32 to vector<10x64xf32>
    %359 = arith.divf %358, %357 : vector<10x64xf32>
    %cst_117 = arith.constant 1.06140542 : f32
    %360 = vector.broadcast %cst_117 : f32 to vector<10x64xf32>
    %361 = arith.mulf %360, %359 : vector<10x64xf32>
    %cst_118 = arith.constant -1.45315206 : f32
    %362 = vector.broadcast %cst_118 : f32 to vector<10x64xf32>
    %363 = arith.addf %361, %362 : vector<10x64xf32>
    %364 = arith.mulf %363, %359 : vector<10x64xf32>
    %cst_119 = arith.constant 1.42141378 : f32
    %365 = vector.broadcast %cst_119 : f32 to vector<10x64xf32>
    %366 = arith.addf %364, %365 : vector<10x64xf32>
    %367 = arith.mulf %366, %359 : vector<10x64xf32>
    %cst_120 = arith.constant -0.284496725 : f32
    %368 = vector.broadcast %cst_120 : f32 to vector<10x64xf32>
    %369 = arith.addf %367, %368 : vector<10x64xf32>
    %370 = arith.mulf %369, %359 : vector<10x64xf32>
    %cst_121 = arith.constant 0.254829586 : f32
    %371 = vector.broadcast %cst_121 : f32 to vector<10x64xf32>
    %372 = arith.addf %370, %371 : vector<10x64xf32>
    %373 = arith.mulf %372, %359 : vector<10x64xf32>
    %cst_122 = arith.constant 0.000000e+00 : f32
    %374 = vector.broadcast %cst_122 : f32 to vector<10x64xf32>
    %375 = arith.subf %374, %353 : vector<10x64xf32>
    %376 = arith.mulf %375, %353 : vector<10x64xf32>
    %377 = math.exp %376 : vector<10x64xf32>
    %378 = arith.mulf %373, %377 : vector<10x64xf32>
    %cst_123 = arith.constant 1.000000e+00 : f32
    %379 = vector.broadcast %cst_123 : f32 to vector<10x64xf32>
    %380 = arith.subf %379, %378 : vector<10x64xf32>
    %381 = arith.mulf %352, %380 : vector<10x64xf32>
    %cst_124 = arith.constant 1.000000e+00 : f32
    %382 = vector.broadcast %cst_124 : f32 to vector<10x64xf32>
    %383 = arith.addf %382, %381 : vector<10x64xf32>
    %384 = arith.mulf %345, %383 : vector<10x64xf32>
    %c320 = arith.constant 320 : index
    %c0_125 = arith.constant 0 : index
    %385 = vector.load %arg1[%c320, %c0_125] : memref<448x32xbf16, #tpu.memory_space<vmem>>, vector<64x32xbf16>
    %386 = arith.truncf %384 : vector<10x64xf32> to vector<10x64xbf16>
    %cst_126 = arith.constant dense<0.000000e+00> : vector<10x32xf32>
    %387 = tpu.matmul %386, %385, %cst_126 {dimension_numbers = #tpu.dot_dimension_numbers<[1], [0], [0], [1], [0, 0, 1, 1], [], []>} : vector<10x64xbf16>, vector<64x32xbf16>, vector<10x32xf32> -> vector<10x32xf32>
    %388 = arith.addf %315, %387 : vector<10x32xf32>
    %c21 = arith.constant 21 : index
    %c0_127 = arith.constant 0 : index
    %389 = vector.load %arg4[%c21, %c0_127] : memref<28x96xf32, #tpu.memory_space<vmem>>, vector<1x32xf32>
    %390 = vector.broadcast %389 : vector<1x32xf32> to vector<10x32xf32>
    %391 = arith.addf %388, %390 : vector<10x32xf32>
    %c22 = arith.constant 22 : index
    %c0_128 = arith.constant 0 : index
    %392 = vector.load %arg4[%c22, %c0_128] : memref<28x96xf32, #tpu.memory_space<vmem>>, vector<1x32xf32>
    %c23 = arith.constant 23 : index
    %c0_129 = arith.constant 0 : index
    %393 = vector.load %arg4[%c23, %c0_129] : memref<28x96xf32, #tpu.memory_space<vmem>>, vector<1x32xf32>
    %cst_130 = arith.constant dense<0.000000e+00> : vector<10xf32>
    %394 = vector.multi_reduction <add>, %391, %cst_130 [1] : vector<10x32xf32> to vector<10xf32>
    %395 = vector.shape_cast %394 : vector<10xf32> to vector<10x1xf32>
    %cst_131 = arith.constant 3.200000e+01 : f32
    %396 = vector.broadcast %cst_131 : f32 to vector<10x1xf32>
    %397 = arith.divf %395, %396 : vector<10x1xf32>
    %398 = vector.broadcast %397 : vector<10x1xf32> to vector<10x32xf32>
    %399 = arith.subf %391, %398 : vector<10x32xf32>
    %400 = arith.mulf %399, %399 : vector<10x32xf32>
    %cst_132 = arith.constant dense<0.000000e+00> : vector<10xf32>
    %401 = vector.multi_reduction <add>, %400, %cst_132 [1] : vector<10x32xf32> to vector<10xf32>
    %402 = vector.shape_cast %401 : vector<10xf32> to vector<10x1xf32>
    %cst_133 = arith.constant 3.200000e+01 : f32
    %403 = vector.broadcast %cst_133 : f32 to vector<10x1xf32>
    %404 = arith.divf %402, %403 : vector<10x1xf32>
    %cst_134 = arith.constant 9.99999974E-6 : f32
    %405 = vector.broadcast %cst_134 : f32 to vector<10x1xf32>
    %406 = arith.addf %404, %405 : vector<10x1xf32>
    %407 = math.rsqrt %406 : vector<10x1xf32>
    %408 = vector.broadcast %407 : vector<10x1xf32> to vector<10x32xf32>
    %409 = arith.mulf %399, %408 : vector<10x32xf32>
    %410 = vector.broadcast %392 : vector<1x32xf32> to vector<10x32xf32>
    %411 = arith.mulf %409, %410 : vector<10x32xf32>
    %412 = vector.broadcast %393 : vector<1x32xf32> to vector<10x32xf32>
    %413 = arith.addf %411, %412 : vector<10x32xf32>
    %c24 = arith.constant 24 : index
    %c0_135 = arith.constant 0 : index
    %414 = vector.load %arg4[%c24, %c0_135] : memref<28x96xf32, #tpu.memory_space<vmem>>, vector<1x32xf32>
    %c384 = arith.constant 384 : index
    %c0_136 = arith.constant 0 : index
    %415 = vector.load %arg1[%c384, %c0_136] : memref<448x32xbf16, #tpu.memory_space<vmem>>, vector<32x32xbf16>
    %416 = arith.truncf %414 : vector<1x32xf32> to vector<1x32xbf16>
    %cst_137 = arith.constant dense<0.000000e+00> : vector<1x32xf32>
    %417 = tpu.matmul %416, %415, %cst_137 {dimension_numbers = #tpu.dot_dimension_numbers<[1], [0], [0], [1], [0, 0, 1, 1], [], []>} : vector<1x32xbf16>, vector<32x32xbf16>, vector<1x32xf32> -> vector<1x32xf32>
    %c25 = arith.constant 25 : index
    %c0_138 = arith.constant 0 : index
    %418 = vector.load %arg4[%c25, %c0_138] : memref<28x96xf32, #tpu.memory_space<vmem>>, vector<1x32xf32>
    %419 = arith.addf %417, %418 : vector<1x32xf32>
    %420 = vector.shape_cast %419 : vector<1x32xf32> to vector<1x32xf32>
    %421 = vector.broadcast %420 : vector<1x32xf32> to vector<2x32xf32>
    %c64 = arith.constant 64 : index
    %c0_139 = arith.constant 0 : index
    %422 = vector.load %arg2[%c64, %c0_139] : memref<96x64xbf16, #tpu.memory_space<vmem>>, vector<32x64xbf16>
    %423 = arith.truncf %413 : vector<10x32xf32> to vector<10x32xbf16>
    %cst_140 = arith.constant dense<0.000000e+00> : vector<10x64xf32>
    %424 = tpu.matmul %423, %422, %cst_140 {dimension_numbers = #tpu.dot_dimension_numbers<[1], [0], [0], [1], [0, 0, 1, 1], [], []>} : vector<10x32xbf16>, vector<32x64xbf16>, vector<10x64xf32> -> vector<10x64xf32>
    %c26 = arith.constant 26 : index
    %c0_141 = arith.constant 0 : index
    %425 = vector.load %arg4[%c26, %c0_141] : memref<28x96xf32, #tpu.memory_space<vmem>>, vector<1x64xf32>
    %426 = vector.broadcast %425 : vector<1x64xf32> to vector<10x64xf32>
    %427 = arith.addf %424, %426 : vector<10x64xf32>
    %428 = vector.extract_strided_slice %427 {offsets = [0, 0], sizes = [10, 32], strides = [1, 1]} : vector<10x64xf32> to vector<10x32xf32>
    %429 = vector.extract_strided_slice %427 {offsets = [0, 32], sizes = [10, 32], strides = [1, 1]} : vector<10x64xf32> to vector<10x32xf32>
    %430 = tpu.concatenate %421, %421, %421, %421 in 0 : vector<2x32xf32>, vector<2x32xf32>, vector<2x32xf32>, vector<2x32xf32> -> vector<8x32xf32>
    %431 = arith.mulf %430, %78 : vector<8x32xf32>
    %432 = arith.truncf %431 : vector<8x32xf32> to vector<8x32xbf16>
    %433 = arith.truncf %428 : vector<10x32xf32> to vector<10x32xbf16>
    %cst_142 = arith.constant dense<0.000000e+00> : vector<8x10xf32>
    %434 = tpu.matmul %432, %433, %cst_142 {dimension_numbers = #tpu.dot_dimension_numbers<[1], [1], [0], [0], [0, 0, 1, 0], [], []>} : vector<8x32xbf16>, vector<10x32xbf16>, vector<8x10xf32> -> vector<8x10xf32>
    %cst_143 = arith.constant 0.353553385 : f32
    %435 = vector.broadcast %cst_143 : f32 to vector<8x10xf32>
    %436 = arith.mulf %434, %435 : vector<8x10xf32>
    %437 = arith.addf %436, %97 : vector<8x10xf32>
    %cst_144 = arith.constant dense<0xFF800000> : vector<8xf32>
    %438 = vector.multi_reduction <maximumf>, %437, %cst_144 [1] : vector<8x10xf32> to vector<8xf32>
    %439 = vector.shape_cast %438 : vector<8xf32> to vector<8x1xf32>
    %440 = vector.broadcast %439 : vector<8x1xf32> to vector<8x10xf32>
    %441 = arith.subf %437, %440 : vector<8x10xf32>
    %442 = math.exp %441 : vector<8x10xf32>
    %cst_145 = arith.constant dense<0.000000e+00> : vector<8xf32>
    %443 = vector.multi_reduction <add>, %442, %cst_145 [1] : vector<8x10xf32> to vector<8xf32>
    %444 = vector.shape_cast %443 : vector<8xf32> to vector<8x1xf32>
    %445 = vector.broadcast %444 : vector<8x1xf32> to vector<8x10xf32>
    %446 = arith.divf %442, %445 : vector<8x10xf32>
    %447 = arith.truncf %446 : vector<8x10xf32> to vector<8x10xbf16>
    %448 = arith.truncf %429 : vector<10x32xf32> to vector<10x32xbf16>
    %cst_146 = arith.constant dense<0.000000e+00> : vector<8x32xf32>
    %449 = tpu.matmul %447, %448, %cst_146 {dimension_numbers = #tpu.dot_dimension_numbers<[1], [0], [0], [1], [0, 0, 1, 1], [], []>} : vector<8x10xbf16>, vector<10x32xbf16>, vector<8x32xf32> -> vector<8x32xf32>
    %450 = arith.mulf %449, %78 : vector<8x32xf32>
    %451 = vector.extract_strided_slice %450 {offsets = [0, 0], sizes = [2, 32], strides = [1, 1]} : vector<8x32xf32> to vector<2x32xf32>
    %452 = vector.extract_strided_slice %450 {offsets = [2, 0], sizes = [2, 32], strides = [1, 1]} : vector<8x32xf32> to vector<2x32xf32>
    %453 = arith.addf %451, %452 : vector<2x32xf32>
    %454 = vector.extract_strided_slice %450 {offsets = [4, 0], sizes = [2, 32], strides = [1, 1]} : vector<8x32xf32> to vector<2x32xf32>
    %455 = arith.addf %453, %454 : vector<2x32xf32>
    %456 = vector.extract_strided_slice %450 {offsets = [6, 0], sizes = [2, 32], strides = [1, 1]} : vector<8x32xf32> to vector<2x32xf32>
    %457 = arith.addf %455, %456 : vector<2x32xf32>
    %c416 = arith.constant 416 : index
    %c0_147 = arith.constant 0 : index
    %458 = vector.load %arg1[%c416, %c0_147] : memref<448x32xbf16, #tpu.memory_space<vmem>>, vector<32x32xbf16>
    %459 = arith.truncf %457 : vector<2x32xf32> to vector<2x32xbf16>
    %cst_148 = arith.constant dense<0.000000e+00> : vector<2x32xf32>
    %460 = tpu.matmul %459, %458, %cst_148 {dimension_numbers = #tpu.dot_dimension_numbers<[1], [0], [0], [1], [0, 0, 1, 1], [], []>} : vector<2x32xbf16>, vector<32x32xbf16>, vector<2x32xf32> -> vector<2x32xf32>
    %c27 = arith.constant 27 : index
    %c0_149 = arith.constant 0 : index
    %461 = vector.load %arg4[%c27, %c0_149] : memref<28x96xf32, #tpu.memory_space<vmem>>, vector<1x32xf32>
    %462 = vector.broadcast %461 : vector<1x32xf32> to vector<2x32xf32>
    %463 = arith.addf %460, %462 : vector<2x32xf32>
    %c0_150 = arith.constant 0 : index
    %c0_151 = arith.constant 0 : index
    %464 = vector.load %arg5[%c0_150, %c0_151] : memref<2x32xf32, #tpu.memory_space<vmem>>, vector<2x32xf32>
    tpu.vector_store %arg5[%c0_150, %c0_151], %463 {strides = array<i32>} : memref<2x32xf32, #tpu.memory_space<vmem>>, vector<2x32xf32>,
    return
  }
}

</mosaic_0001>

<bundles_post_ra>
// kernel: encode_image.1
= control target key start
LH: loop header
LB: loop body
LE: loop exit
PB: predicated region body
PF: predicated region fallthrough
CT: control target
= control target key end

     0   :  { %v2471_v1 = vmov 0   ;;  %vm3065_vm0 = vcmask 523264   ;;  %s3059_s0 = inlined_call_operand.vmem [shape: f32[10,192], index: 0, kind: input, shape index: {}]   ;;  %s3060_s1 = inlined_call_operand.vmem [shape: bf16[448,32], index: 1, kind: input, shape index: {}]   ;;  %s3061_s2 = inlined_call_operand.vmem [shape: bf16[96,64], index: 2, kind: input, shape index: {}]   ;;  %s3062_s3 = inlined_call_operand.vmem [shape: bf16[64,96], index: 3, kind: input, shape index: {}]   ;;  %s3063_s4 = inlined_call_operand.vmem [shape: f32[28,96], index: 4, kind: input, shape index: {}]   ;;  %s3064_s5 = inlined_call_operand.hbm [shape: f32[2,32], index: 5, kind: output, shape index: {}]  }
   0x1   :  { %v2329_v0 = vld [vmem:[%s3060_s1] sm:$0xff]   ;;  %209 = vmatprep.subr.bf16.mxu0 %v2471_v1  ;;  %v2330_v2 = vld [vmem:[%s3060_s1 + $0x8] sm:$0xff]   ;;  %v2331_v3 = vld [vmem:[%s3060_s1 + $0x10] sm:$0xff]  }
   0x2   :  { %210 = vmatpush1.bf16.msra.mxu0 %v2329_v0  ;;  %v2332_v4 = vld [vmem:[%s3060_s1 + $0x18] sm:$0xff]   ;;  %v99_v5 = vld [vmem:[%s3059_s0 + $0x8] sm:$0xff]  ;;  %v2333_v8 = vld [vmem:[%s3060_s1 + $0x20] sm:$0xff]  }
   0x3   :  { %211 = vmatprep.subr.bf16.mxu0 %v2471_v1  ;;  %v101_v6 = vld [vmem:[%s3059_s0 + $0x18] sm:$0x3]  ;;  %v2334_v9 = vld [vmem:[%s3060_s1 + $0x28] sm:$0xff]   ;;  %v2335_v10 = vld [vmem:[%s3060_s1 + $0x30] sm:$0xff]  }
   0x4   :  { %v127_v7 = vpack.c.bf16 %v101_v6, %v99_v5  ;;  %v2336_v11 = vld [vmem:[%s3060_s1 + $0x38] sm:$0xff]   ;;  %v2337_v12 = vld [vmem:[%s3060_s1 + $0x40] sm:$0xff]  }
   0x6   :  { %212 = vmatpush1.bf16.msra.mxu0 %v2330_v2  ;;  %2028 = vmatprep.mubr.msk.bf16.mxu0 %vm3065_vm0, %v127_v7 }
   0x7   :  { %213 = vmatprep.subr.bf16.mxu0 %v2471_v1 }
   0xa   :  { %214 = vmatpush1.bf16.msra.mxu0 %v2331_v3 }
   0xb   :  { %215 = vmatprep.subr.bf16.mxu0 %v2471_v1 }
   0xe   :  { %216 = vmatpush1.bf16.msra.mxu0 %v2332_v4 }
   0xf   :  { %217 = vmatprep.subr.bf16.mxu0 %v2471_v1 }
  0x12   :  { %218 = vmatpush1.bf16.msra.mxu0 %v2333_v8 }
  0x13   :  { %219 = vmatprep.subr.bf16.mxu0 %v2471_v1 }
  0x16   :  { %220 = vmatpush1.bf16.msra.mxu0 %v2334_v9 }
  0x17   :  { %221 = vmatprep.subr.bf16.mxu0 %v2471_v1 }
  0x1a   :  { %222 = vmatpush1.bf16.msra.mxu0 %v2335_v10 }
  0x1b   :  { %223 = vmatprep.subr.bf16.mxu0 %v2471_v1 }
  0x1e   :  { %224 = vmatpush1.bf16.msra.mxu0 %v2336_v11 }
  0x1f   :  { %225 = vmatprep.subr.bf16.mxu0 %v2471_v1 }
  0x20   :  { %10 = vsyncpa [#allocation3], 0  ;;  %v2338_v13 = vld [vmem:[%s3060_s1 + $0x48] sm:$0xff]   ;;  %v2339_v14 = vld [vmem:[%s3060_s1 + $0x50] sm:$0xff]   ;;  %vm58_vm1 = vcmask 1044480   ;;  %vm254_vm2 = vcmask 261120   ;;  %v22_v63 = vlaneseq }
  0x21   :  { %v2340_v15 = vld [vmem:[%s3060_s1 + $0x58] sm:$0xff]   ;;  %v98_v16 = vld [vmem:[%s3059_s0] sm:$0xff]  ;;  %v100_v17 = vld [vmem:[%s3059_s0 + $0x10] sm:$0x3]  ;;  %vm258_vm3 = vcmask 254976   ;;  %v2472_v44 = vmov 0.0  }
  0x22   :  { %226 = vmatpush1.bf16.msra.mxu0 %v2337_v12  ;;  %v126_v18 = vpack.c.bf16 %v100_v17, %v98_v16  ;;  %v93_v19 = vld [vmem:[%s3063_s4] sm:$0x1f]  ;;  %v2015_v21 = vld [vmem:[%s3063_s4 + $0x5] ss:$0 sm:$0xff]  ;;  %2157 = vmatprep.subr.bf16.mxu1 %v2472_v44  ;;  %v2342_v45 = vld [vmem:[%s3062_s3 + $0x8] sm:$0xff]   ;;  %vm2473_vm4 = vmmov 0  }
  0x23   :  { %227 = vmatprep.subr.bf16.mxu0 %v2471_v1  ;;  %v95_v20 = vrot.slane %v93_v19, 3  ;;  %v2341_v43 = vld [vmem:[%s3062_s3] sm:$0xff]   ;;  %2161 = vmatprep.mubr.msk.bf16.mxu1 %vm2473_vm4, %v2472_v44  ;;  %v2601_v0 = vand.u32 127, %v22_v63  ;;  %vm44_vm14 = vcmask 1041408   ;;  %vm46_vm0 = vcmask 1043456   ;;  %s2474_s13 = smov 96  }
  0x24   :  { %2158 = vmatpush3.bf16.msra.mxu1 %v2341_v43  ;;  %v2029_v54 = vld [vmem:[%s3063_s4 + $0x6] ss:$0 sm:$0xff]  ;;  %v2030_v58 = vld [vmem:[%s3063_s4 + $0x7] ss:$0 sm:$0xff]  ;;  %s2476_s14 = smov 64  }
  0x25   :  { %v97_v22 = vsel %vm58_vm1, %v93_v19, %v95_v20  ;;  %2159 = vmatprep.subr.bf16.mxu1 %v2472_v44  ;;  %vm29_vm5 = vcmp.ge.s32.totalorder %v2601_v0, 8  ;;  %vm30_vm6 = vcmp.lt.s32.totalorder %v2601_v0, 16  ;;  %vm34_vm7 = vcmp.ge.s32.totalorder %v2601_v0, 16 }
  0x26   :  { %228 = vmatpush1.bf16.msra.mxu0 %v2338_v13  ;;  %vm35_vm8 = vcmp.lt.s32.totalorder %v2601_v0, 24  ;;  %vm31_vm9 = vmand %vm29_vm5, %vm30_vm6  ;;  %vm39_vm10 = vcmp.ge.s32.totalorder %v2601_v0, 24  ;;  %vm40_vm11 = vcmp.lt.s32.totalorder %v2601_v0, 32  ;;  %vm25_vm13 = vcmp.lt.s32.totalorder %v2601_v0, 8 }
  0x27   :  { %229 = vmatprep.subr.bf16.mxu0 %v2471_v1  ;;  %vm36_vm12 = vmand %vm34_vm7, %vm35_vm8  ;;  %v2012_v5 = vsel %vm31_vm9, 1.0, %v2472_v44  ;;  %v2618_v8 = vsel %vm25_vm13, 1.0, %v2472_v44  ;;  %vm48_vm5 = vcmask 1045504   ;;  %vm53_vm6 = vcmp.ge.s32.totalorder %v2601_v0, 5 }
  0x28   :  { %2160 = vmatpush3.bf16.msra.mxu1 %v2342_v45  ;;  %vm41_vm15 = vmand %vm39_vm10, %vm40_vm11  ;;  %v2615_v7 = vsel %vm36_vm12, 1.0, %v2472_v44  ;;  %v2622_v12 = vsel %vm44_vm14, %v2618_v8, %v2012_v5  ;;  %vm54_vm7 = vcmp.lt.s32.totalorder %v2601_v0, 10  ;;  %vm50_vm8 = vcmp.lt.s32.totalorder %v2601_v0, 5 }
  0x29   :  { %2165 = vmatprep.subr.bf16.mxu1 %v2472_v44  ;;  %v2625_v13 = vsel %vm41_vm15, 1.0, %v2472_v44  ;;  %v2629_v16 = vsel %vm46_vm0, %v2012_v5, %v2615_v7  ;;  %vm55_vm9 = vmand %vm53_vm6, %vm54_vm7  ;;  %vm471_vm10 = vcmask 80896   ;;  %vm3066_vm13 = vcmask 523264  }
  0x2a   :  { %230 = vmatpush1.bf16.msra.mxu0 %v2339_v14  ;;  %vm3067_vm7 = vmmov %vm3066_vm13 }
  0x2b   :  { %231 = vmatprep.subr.bf16.mxu0 %v2471_v1  ;;  %v2031_v1 = vld [vmem:[%s3063_s4 + $0x8] ss:$0 sm:$0xff] }
  0x2e   :  { %232 = vmatpush1.bf16.msra.mxu0 %v2340_v15 }
  0x2f   :  { %2193 = vmatprep.subr.bf16.mxu0 %v2472_v44 }
  0x31   :  { %242 = vmatmul.mubr.bf16.vlgmr.msra.gmra.mrb[0].mxu0 %v126_v18 }
  0x32   :  { %2197 = vmatprep.mubr.msk.bf16.mxu0 %vm2473_vm4, %v2472_v44 }
 0x104   :  { %v243_v23 = vpop.f32.mrb[0].mxu0 }
 0x105   :  { %v244_v24 = vadd.f32 %v2015_v21, %v243_v23  ;;  %v245_v25 = vpop.f32.mrb[1].mxu0 }
 0x106   :  { %v246_v26 = vpop.f32.mrb[2].mxu0 }
 0x107   :  { %v2565_v27 = vadd.f32 %v244_v24, %v97_v22  ;;  %v247_v28 = vadd.f32 %v2015_v21, %v246_v26  ;;  %v248_v29 = vpop.f32.mrb[3].mxu0  ;;  %v2639_v24 = vsel %vm48_vm5, %v2615_v7, %v2625_v13 }
 0x109   :  { %v2567_v30 = vadd.f32 %v247_v28, %v95_v20  ;;  %v255_v31 = vsel %vm254_vm2, %v2565_v27, 0.0 }
 0x10a   :  { %256 = vadd.xlane.f32.xlu0 %v255_v31 }
 0x10b   :  { %v259_v32 = vsel %vm258_vm3, %v2567_v30, 0.0 }
 0x10e   :  { %260 = vadd.xlane.f32.xlu0 %v259_v32 }
 0x197   :  { %v257_v33 = vpop.xlane.xlu0 %256 }
 0x198   :  { %v263_v34 = vmul.f32 0.03125, %v257_v33 }
 0x19a   :  { %v265_v35 = vsub.f32 %v2565_v27, %v263_v34 }
 0x19b   :  { %v261_v36 = vpop.xlane.xlu0 %260 }
 0x19c   :  { %v264_v37 = vmul.f32 0.03125, %v261_v36  ;;  %v267_v38 = vmul.f32 %v265_v35, %v265_v35 }
 0x19e   :  { %v266_v39 = vsub.f32 %v2567_v30, %v264_v37  ;;  %v269_v40 = vsel %vm254_vm2, %v267_v38, 0.0 }
 0x19f   :  { %270 = vadd.xlane.f32.xlu1 %v269_v40  ;;  %v2475_v40 = vmov -1e+30  }
 0x1a0   :  { %v268_v41 = vmul.f32 %v266_v39, %v266_v39 }
 0x1a2   :  { %v272_v42 = vsel %vm258_vm3, %v268_v41, 0.0  ;;  %v2665_v41 = vsel %vm50_vm8, 0.0, %v2475_v40  ;;  %vm81_vm8 = vcmask 1040384  }
 0x1a3   :  { %273 = vadd.xlane.f32.xlu1 %v272_v42  ;;  %v2667_v42 = vsel %vm55_vm9, 0.0, %v2475_v40 }
 0x1a4   :  { %v2672_v43 = vsel %vm58_vm1, %v2665_v41, %v2667_v42 }
 0x1a5   :  { %v61_v45 = vrot.slane %v2672_v43, 6 }
 0x22c   :  { %v271_v46 = vpop.xlane.xlu1 %270 }
 0x22d   :  { %v275_v47 = vmul.f32 0.03125, %v271_v46 }
 0x22f   :  { %v277_v48 = vadd.f32 1e-05, %v275_v47 }
 0x230   :  { %v274_v49 = vpop.xlane.xlu1 %273 }
 0x231   :  { %2367 = vrsqrt.f32 %v277_v48  ;;  %v276_v50 = vmul.f32 0.03125, %v274_v49  ;;  %v62_v49 = vrot.slane %v2667_v42, 6 }
 0x233   :  { %v278_v51 = vadd.f32 1e-05, %v276_v50 }
 0x235   :  { %2369 = vrsqrt.f32 %v278_v51  ;;  %v2678_v51 = vsel %vm44_vm14, %v2667_v42, %v61_v45 }
 0x23b   :  { %v2368_v52 = vpop.eup %2367 }
 0x23c   :  { %v281_v53 = vmul.f32 %v2368_v52, %v265_v35 }
 0x23e   :  { %v287_v57 = vmul.f32 %v2029_v54, %v281_v53 }
 0x23f   :  { %v2370_v55 = vpop.eup %2369 }
 0x240   :  { %v282_v56 = vmul.f32 %v2370_v55, %v266_v39  ;;  %v293_v60 = vadd.f32 %v2030_v58, %v287_v57  ;;  %v66_v55 = vrot.slane %v2672_v43, 4 }
 0x242   :  { %v288_v59 = vmul.f32 %v2029_v54, %v282_v56  ;;  %v67_v56 = vrot.slane %v2667_v42, 4 }
 0x244   :  { %v294_v61 = vadd.f32 %v2030_v58, %v288_v59  ;;  %v63_v59 = vsel %vm44_vm14, %v61_v45, %v62_v49 }
 0x245   :  { %v2689_v0 = vsel %vm46_vm0, %v63_v59, %v66_v55 }
 0x246   :  { %v299_v62 = vpack.c.bf16 %v294_v61, %v293_v60  ;;  %v71_v60 = vrot.slane %v2672_v43, 2  ;;  %v68_v61 = vsel %vm46_vm0, %v66_v55, %v67_v56 }
 0x248   :  { %2162 = vmatmul.mubr.msk.bf16.vlgmr.msra.gmra.mrb[0].mxu1 %vm254_vm2, %v299_v62  ;;  %v2693_v5 = vsel %vm48_vm5, %v68_v61, %v71_v60 }
 0x249   :  { %2167 = vmatprep.mubr.msk.bf16.mxu1 %vm2473_vm4, %v2472_v44 }
 0x31b   :  { %v354_v2 = vpop.f32.mrb[0].mxu1 }
 0x31c   :  { %v355_v3 = vadd.f32 %v2031_v1, %v354_v2  ;;  %v2163_v4 = vpop.f32.mrb[1].mxu1 }
 0x31d   :  { %v357_v6 = vpop.f32.mrb[2].mxu1 }
 0x31e   :  { %v363_v9 = vrot.slane %v355_v3, 6  ;;  %v2164_v10 = vpop.f32.mrb[3].mxu1  ;;  %v358_v11 = vadd.f32 %v2031_v1, %v357_v6  ;;  %v368_v14 = vrot.slane %v355_v3, 4  ;;  %v373_v15 = vrot.slane %v355_v3, 2 }
 0x31f   :  { %v381_v21 = vmul.f32 %v2618_v8, %v355_v3 }
 0x320   :  { %v364_v17 = vrot.slane %v358_v11, 6  ;;  %v369_v18 = vrot.slane %v358_v11, 4  ;;  %v374_v19 = vrot.slane %v358_v11, 2  ;;  %v378_v20 = vsel %vm44_vm14, %v358_v11, %v363_v9 }
 0x321   :  { %v2633_v22 = vpack.c.bf16 %v358_v11, %v355_v3  ;;  %v382_v23 = vmul.f32 %v378_v20, %v2622_v12  ;;  %v72_v11 = vrot.slane %v2667_v42, 2 }
 0x322   :  { %v365_v25 = vsel %vm44_vm14, %v363_v9, %v364_v17  ;;  %v370_v26 = vsel %vm46_vm0, %v368_v14, %v369_v18  ;;  %v375_v28 = vsel %vm48_vm5, %v373_v15, %v374_v19 }
 0x323   :  { %391 = vrot.lane.b32.xlu0 %v2633_v22, %s2474_s13  ;;  %v386_v29 = vpack.c.bf16 %v382_v23, %v381_v21  ;;  %v379_v31 = vsel %vm46_vm0, %v365_v25, %v368_v14  ;;  %v380_v32 = vsel %vm48_vm5, %v370_v26, %v373_v15  ;;  %v385_v38 = vmul.f32 %v2625_v13, %v375_v28 }
 0x324   :  { %v383_v33 = vmul.f32 %v379_v31, %v2629_v16  ;;  %v384_v34 = vmul.f32 %v380_v32, %v2639_v24  ;;  %v2700_v18 = vsel %vm48_vm5, %v71_v60, %v72_v11 }
 0x325   :  { %v388_v39 = vpack.c.bf16 %v385_v38, %v385_v38 }
 0x326   :  { %v387_v35 = vpack.c.bf16 %v384_v34, %v383_v33 }
 0x395   :  { %v392_v36 = vpop.permute.xlu0 %391 }
 0x396   :  { %v403_v37 = vsel %vm254_vm2, %v392_v36, 0 }
 0x397   :  { %2166 = vmatpush3.bf16.xpose.msra.mxu1 %v403_v37 }
 0x398   :  { %2179 = vmatprep.subr.bf16.mxu1 %v2472_v44 }
 0x39e   :  { %2168 = vmatmul.mubr.msk.bf16.vlgmr.msra.gmra.mrb[4].mxu1 %vm254_vm2, %v386_v29 }
 0x39f   :  { %2171 = vmatprep.mubr.msk.bf16.mxu1 %vm2473_vm4, %v2472_v44 }
 0x3a6   :  { %2172 = vmatmul.mubr.msk.bf16.gmra.mrb[8].mxu1 %vm254_vm2, %v387_v35 }
 0x3a7   :  { %2175 = vmatprep.mubr.msk.bf16.mxu1 %vm2473_vm4, %v2472_v44 }
 0x3ae   :  { %2176 = vmatmul.mubr.msk.bf16.gmra.mrb[12].mxu1 %vm254_vm2, %v388_v39 }
 0x3af   :  { %2181 = vmatprep.mubr.msk.bf16.mxu1 %vm2473_vm4, %v2472_v44 }
 0x471   :  { %v439_v46 = vpop.f32.mrb[4].mxu1 }
 0x472   :  { %v461_v47 = vmul.f32 0.35355338, %v439_v46  ;;  %v2169_v48 = vpop.f32.mrb[5].mxu1 }
 0x473   :  { %v442_v50 = vpop.f32.mrb[6].mxu1 }
 0x474   :  { %v462_v52 = vmul.f32 0.35355338, %v442_v50  ;;  %v2170_v53 = vpop.f32.mrb[7].mxu1  ;;  %v466_v54 = vadd.f32 %v461_v47, %v2672_v43 }
 0x476   :  { %v472_v57 = vsel %vm471_vm10, %v466_v54, -inf  ;;  %v467_v58 = vadd.f32 %v462_v52, %v2678_v51 }
 0x477   :  { %473 = vmax.xlane.f32.xlu1 %v472_v57 }
 0x478   :  { %v475_v3 = vsel %vm471_vm10, %v467_v58, -inf }
 0x479   :  { %v447_v62 = vpop.f32.mrb[8].mxu1 }
 0x47a   :  { %v463_v1 = vmul.f32 0.35355338, %v447_v62  ;;  %v2173_v2 = vpop.f32.mrb[9].mxu1 }
 0x47b   :  { %476 = vmax.xlane.f32.xlu1 %v475_v3  ;;  %v450_v4 = vpop.f32.mrb[10].mxu1 }
 0x47c   :  { %v464_v6 = vmul.f32 0.35355338, %v450_v4  ;;  %v2174_v9 = vpop.f32.mrb[11].mxu1  ;;  %v468_v10 = vadd.f32 %v463_v1, %v2689_v0 }
 0x47e   :  { %v478_v14 = vsel %vm471_vm10, %v468_v10, -inf  ;;  %v469_v15 = vadd.f32 %v464_v6, %v2693_v5 }
 0x47f   :  { %479 = vmax.xlane.f32.xlu1 %v478_v14 }
 0x480   :  { %v481_v21 = vsel %vm471_vm10, %v469_v15, -inf }
 0x481   :  { %v455_v17 = vpop.f32.mrb[12].mxu1 }
 0x482   :  { %v465_v19 = vmul.f32 0.35355338, %v455_v17  ;;  %v2177_v20 = vpop.f32.mrb[13].mxu1 }
 0x483   :  { %482 = vmax.xlane.f32.xlu1 %v481_v21  ;;  %v458_v23 = vpop.f32.mrb[14].mxu1 }
 0x484   :  { %v2178_v25 = vpop.f32.mrb[15].mxu1  ;;  %v470_v26 = vadd.f32 %v465_v19, %v2700_v18 }
 0x486   :  { %v484_v28 = vsel %vm471_vm10, %v470_v26, -inf }
 0x487   :  { %485 = vmax.xlane.f32.xlu1 %v484_v28  ;;  %v2344_v28 = vld [vmem:[%s3060_s1 + $0x68] sm:$0xff]  }
 0x504   :  { %v474_v29 = vpop.xlane.xlu1 %473 }
 0x505   :  { %v487_v31 = vsub.f32 %v466_v54, %v474_v29 }
 0x507   :  { %v492_v32 = vmul.f32 1.442695, %v487_v31 }
 0x508   :  { %v477_v33 = vpop.xlane.xlu1 %476 }
 0x509   :  { %2371 = vpow2.f32 %v492_v32  ;;  %v488_v34 = vsub.f32 %v467_v58, %v477_v33 }
 0x50b   :  { %v494_v35 = vmul.f32 1.442695, %v488_v34 }
 0x50c   :  { %v480_v36 = vpop.xlane.xlu1 %479 }
 0x50d   :  { %2373 = vpow2.f32 %v494_v35  ;;  %v489_v37 = vsub.f32 %v468_v10, %v480_v36 }
 0x50f   :  { %v496_v38 = vmul.f32 1.442695, %v489_v37 }
 0x510   :  { %v483_v39 = vpop.xlane.xlu1 %482 }
 0x511   :  { %2375 = vpow2.f32 %v496_v38  ;;  %v490_v40 = vsub.f32 %v469_v15, %v483_v39 }
 0x513   :  { %v2372_v45 = vpop.eup %2371  ;;  %v498_v46 = vmul.f32 1.442695, %v490_v40 }
 0x514   :  { %v486_v47 = vpop.xlane.xlu1 %485  ;;  %v502_v48 = vsel %vm471_vm10, %v2372_v45, 0.0 }
 0x515   :  { %2377 = vpow2.f32 %v498_v46  ;;  %v491_v49 = vsub.f32 %v470_v26, %v486_v47  ;;  %503 = vadd.xlane.f32.xlu1 %v502_v48  ;;  %v2343_v26 = vld [vmem:[%s3060_s1 + $0x60] sm:$0xff]  }
 0x516   :  { %2194 = vmatpush3.bf16.msra.mxu0 %v2343_v26 }
 0x517   :  { %v2374_v50 = vpop.eup %2373  ;;  %v500_v52 = vmul.f32 1.442695, %v491_v49  ;;  %2195 = vmatprep.subr.bf16.mxu0 %v2472_v44 }
 0x518   :  { %v505_v53 = vsel %vm471_vm10, %v2374_v50, 0.0 }
 0x519   :  { %2379 = vpow2.f32 %v500_v52  ;;  %506 = vadd.xlane.f32.xlu0 %v505_v53 }
 0x51a   :  { %2196 = vmatpush3.bf16.msra.mxu0 %v2344_v28 }
 0x51b   :  { %v2376_v54 = vpop.eup %2375  ;;  %2201 = vmatprep.subr.bf16.mxu0 %v2472_v44 }
 0x51c   :  { %v508_v55 = vsel %vm471_vm10, %v2376_v54, 0.0 }
 0x51d   :  { %509 = vadd.xlane.f32.xlu1 %v508_v55 }
 0x51f   :  { %v2378_v56 = vpop.eup %2377 }
 0x520   :  { %v511_v57 = vsel %vm471_vm10, %v2378_v56, 0.0 }
 0x521   :  { %512 = vadd.xlane.f32.xlu1 %v511_v57 }
 0x523   :  { %v2380_v58 = vpop.eup %2379 }
 0x524   :  { %v514_v59 = vsel %vm471_vm10, %v2380_v58, 0.0 }
 0x525   :  { %515 = vadd.xlane.f32.xlu1 %v514_v59 }
 0x536   :  { %530 = vrot.lane.b32.xlu1 %v2633_v22, %s2476_s14 }
 0x5a2   :  { %v504_v60 = vpop.xlane.xlu1 %503 }
 0x5a6   :  { %v507_v61 = vpop.xlane.xlu0 %506 }
 0x5a7   :  { %2381 = vrcp.f32 %v507_v61 }
 0x5a8   :  { %2383 = vrcp.f32 %v504_v60 }
 0x5aa   :  { %v510_v62 = vpop.xlane.xlu1 %509 }
 0x5ae   :  { %v513_v1 = vpop.xlane.xlu1 %512 }
 0x5af   :  { %2385 = vrcp.f32 %v513_v1 }
 0x5b0   :  { %2387 = vrcp.f32 %v510_v62 }
 0x5b1   :  { %v2382_v2 = vpop.eup %2381 }
 0x5b2   :  { %v516_v3 = vpop.xlane.xlu1 %515  ;;  %v2384_v4 = vpop.eup %2383  ;;  %v520_v6 = vmul.f32 %v2382_v2, %v2374_v50 }
 0x5b3   :  { %v518_v10 = vmul.f32 %v2384_v4, %v2372_v45  ;;  %2389 = vrcp.f32 %v516_v3 }
 0x5b5   :  { %v527_v14 = vpack.c.bf16 %v520_v6, %v518_v10  ;;  %v2044_v10 = vld [vmem:[%s3063_s4 + $0x9] ss:$0 sm:$0xff] }
 0x5b6   :  { %v531_v9 = vpop.permute.xlu1 %530 }
 0x5b7   :  { %v542_v11 = vsel %vm58_vm1, %v531_v9, 0 }
 0x5b8   :  { %2180 = vmatpush3.bf16.msra.mxu1 %v542_v11 }
 0x5b9   :  { %2209 = vmatprep.subr.bf16.mxu1 %v2472_v44  ;;  %v2386_v22 = vpop.eup %2385 }
 0x5ba   :  { %v2388_v15 = vpop.eup %2387  ;;  %v524_v17 = vmul.f32 %v2386_v22, %v2378_v56 }
 0x5bb   :  { %2182 = vmatmul.mubr.msk.bf16.vlgmr.msra.gmra.mrb[16].mxu1 %vm471_vm10, %v527_v14  ;;  %v522_v19 = vmul.f32 %v2388_v15, %v2376_v54 }
 0x5bc   :  { %2185 = vmatprep.mubr.msk.bf16.mxu1 %vm2473_vm4, %v2472_v44 }
 0x5bd   :  { %v528_v20 = vpack.c.bf16 %v524_v17, %v522_v19  ;;  %v2390_v21 = vpop.eup %2389 }
 0x5be   :  { %v526_v23 = vmul.f32 %v2390_v21, %v2380_v58 }
 0x5c0   :  { %v529_v25 = vpack.c.bf16 %v526_v23, %v526_v23 }
 0x5c3   :  { %2186 = vmatmul.mubr.msk.bf16.gmra.mrb[20].mxu1 %vm471_vm10, %v528_v20 }
 0x5c4   :  { %2189 = vmatprep.mubr.msk.bf16.mxu1 %vm2473_vm4, %v2472_v44 }
 0x5cb   :  { %2190 = vmatmul.mubr.msk.bf16.gmra.mrb[24].mxu1 %vm471_vm10, %v529_v25 }
 0x5cc   :  { %2217 = vmatprep.mubr.msk.bf16.mxu1 %vm2473_vm4, %v2472_v44 }
 0x68e   :  { %v578_v29 = vpop.f32.mrb[16].mxu1 }
 0x68f   :  { %v2183_v31 = vpop.f32.mrb[17].mxu1  ;;  %v600_v47 = vmul.f32 %v2618_v8, %v578_v29 }
 0x690   :  { %v581_v32 = vpop.f32.mrb[18].mxu1 }
 0x691   :  { %v2184_v33 = vpop.f32.mrb[19].mxu1  ;;  %v601_v34 = vmul.f32 %v581_v32, %v2622_v12 }
 0x693   :  { %v607_v39 = vrot.slane %v601_v34, 2 }
 0x696   :  { %v586_v35 = vpop.f32.mrb[20].mxu1 }
 0x697   :  { %v602_v36 = vmul.f32 %v586_v35, %v2629_v16  ;;  %v2187_v37 = vpop.f32.mrb[21].mxu1  ;;  %v2345_v35 = vld [vmem:[%s3061_s2] sm:$0xff]  }
 0x698   :  { %v589_v38 = vpop.f32.mrb[22].mxu1 }
 0x699   :  { %v608_v40 = vrot.slane %v602_v36, 2  ;;  %v603_v45 = vmul.f32 %v589_v38, %v2639_v24  ;;  %v2188_v46 = vpop.f32.mrb[23].mxu1  ;;  %v615_v50 = vrot.slane %v602_v36, 4  ;;  %v2346_v36 = vld [vmem:[%s3061_s2 + $0x8] sm:$0xff]  }
 0x69b   :  { %v609_v48 = vsel %vm48_vm5, %v607_v39, %v608_v40  ;;  %v613_v49 = vadd.f32 %v608_v40, %v601_v34  ;;  %v616_v52 = vrot.slane %v603_v45, 4  ;;  %v623_v61 = vrot.slane %v603_v45, 6 }
 0x69c   :  { %v612_v53 = vadd.f32 %v609_v48, %v600_v47 }
 0x69d   :  { %v617_v54 = vsel %vm46_vm0, %v615_v50, %v616_v52  ;;  %v621_v55 = vadd.f32 %v616_v52, %v613_v49  ;;  %v2045_v49 = vld [vmem:[%s3063_s4 + $0xa] ss:$0 sm:$0xff] }
 0x69e   :  { %v620_v56 = vadd.f32 %v617_v54, %v612_v53  ;;  %v594_v57 = vpop.f32.mrb[24].mxu1  ;;  %v2046_v54 = vld [vmem:[%s3063_s4 + $0xb] ss:$0 sm:$0xff] }
 0x69f   :  { %v604_v58 = vmul.f32 %v2625_v13, %v594_v57  ;;  %v2191_v59 = vpop.f32.mrb[25].mxu1 }
 0x6a0   :  { %v597_v60 = vpop.f32.mrb[26].mxu1  ;;  %v2347_v59 = vld [vmem:[%s3060_s1 + $0x80] sm:$0xff]  }
 0x6a1   :  { %v624_v62 = vrot.slane %v604_v58, 6  ;;  %v2192_v1 = vpop.f32.mrb[27].mxu1  ;;  %2210 = vmatpush3.bf16.msra.mxu1 %v2347_v59  ;;  %v2348_v60 = vld [vmem:[%s3060_s1 + $0x88] sm:$0xff]  }
 0x6a2   :  { %2211 = vmatprep.subr.bf16.mxu1 %v2472_v44  ;;  %v2047_v1 = vld [vmem:[%s3063_s4 + $0xc] ss:$0 sm:$0xff] }
 0x6a3   :  { %v625_v2 = vsel %vm44_vm14, %v623_v61, %v624_v62  ;;  %v629_v3 = vadd.f32 %v624_v62, %v621_v55  ;;  %v2349_v61 = vld [vmem:[%s3060_s1 + $0x90] sm:$0xff]   ;;  %v2350_v62 = vld [vmem:[%s3060_s1 + $0x98] sm:$0xff]  }
 0x6a4   :  { %v628_v4 = vadd.f32 %v625_v2, %v620_v56 }
 0x6a5   :  { %2212 = vmatpush3.bf16.msra.mxu1 %v2348_v60 }
 0x6a6   :  { %v634_v6 = vpack.c.bf16 %v629_v3, %v628_v4  ;;  %2213 = vmatprep.subr.bf16.mxu1 %v2472_v44 }
 0x6a8   :  { %2198 = vmatmul.mubr.msk.bf16.vlgmr.msra.gmra.mrb[4].mxu0 %vm254_vm2, %v634_v6 }
 0x6a9   :  { %2205 = vmatprep.mubr.msk.bf16.mxu0 %vm2473_vm4, %v2472_v44  ;;  %2202 = vmatpush3.bf16.msra.mxu0 %v2345_v35 }
 0x6aa   :  { %2203 = vmatprep.subr.bf16.mxu0 %v2472_v44  ;;  %2214 = vmatpush3.bf16.msra.mxu1 %v2349_v61  ;;  %v2477_v61 = vmov -1.0  }
 0x6ab   :  { %2215 = vmatprep.subr.bf16.mxu1 %v2472_v44 }
 0x6ad   :  { %2204 = vmatpush3.bf16.msra.mxu0 %v2346_v36 }
 0x6ae   :  { %2221 = vmatprep.subr.bf16.mxu0 %v2472_v44  ;;  %2216 = vmatpush3.bf16.msra.mxu1 %v2350_v62 }
 0x6af   :  { %2229 = vmatprep.subr.bf16.mxu1 %v2472_v44 }
 0x77b   :  { %v684_v9 = vpop.f32.mrb[4].mxu0 }
 0x77c   :  { %v691_v11 = vadd.f32 %v684_v9, %v2565_v27  ;;  %v2199_v14 = vpop.f32.mrb[5].mxu0 }
 0x77d   :  { %v687_v22 = vpop.f32.mrb[6].mxu0 }
 0x77e   :  { %v2746_v15 = vadd.f32 %v2044_v10, %v691_v11  ;;  %v692_v17 = vadd.f32 %v687_v22, %v2567_v30  ;;  %v2200_v19 = vpop.f32.mrb[7].mxu0 }
 0x780   :  { %v2749_v20 = vadd.f32 %v2044_v10, %v692_v17  ;;  %v702_v21 = vsel %vm254_vm2, %v2746_v15, 0.0 }
 0x781   :  { %703 = vadd.xlane.f32.xlu0 %v702_v21 }
 0x782   :  { %v705_v23 = vsel %vm258_vm3, %v2749_v20, 0.0 }
 0x783   :  { %706 = vadd.xlane.f32.xlu1 %v705_v23 }
 0x80e   :  { %v704_v25 = vpop.xlane.xlu0 %703 }
 0x80f   :  { %v708_v26 = vmul.f32 0.03125, %v704_v25 }
 0x810   :  { %v707_v27 = vpop.xlane.xlu1 %706 }
 0x811   :  { %v710_v28 = vsub.f32 %v2746_v15, %v708_v26  ;;  %v709_v29 = vmul.f32 0.03125, %v707_v27 }
 0x813   :  { %v711_v31 = vsub.f32 %v2749_v20, %v709_v29  ;;  %v712_v30 = vmul.f32 %v710_v28, %v710_v28 }
 0x815   :  { %v714_v32 = vsel %vm254_vm2, %v712_v30, 0.0  ;;  %v713_v33 = vmul.f32 %v711_v31, %v711_v31 }
 0x816   :  { %715 = vadd.xlane.f32.xlu0 %v714_v32 }
 0x817   :  { %v717_v34 = vsel %vm258_vm3, %v713_v33, 0.0 }
 0x81a   :  { %718 = vadd.xlane.f32.xlu0 %v717_v34 }
 0x8a3   :  { %v716_v37 = vpop.xlane.xlu0 %715 }
 0x8a4   :  { %v720_v38 = vmul.f32 0.03125, %v716_v37 }
 0x8a6   :  { %v722_v39 = vadd.f32 1e-05, %v720_v38 }
 0x8a7   :  { %v719_v40 = vpop.xlane.xlu0 %718 }
 0x8a8   :  { %2391 = vrsqrt.f32 %v722_v39  ;;  %v721_v45 = vmul.f32 0.03125, %v719_v40 }
 0x8aa   :  { %v723_v46 = vadd.f32 1e-05, %v721_v45 }
 0x8ac   :  { %2393 = vrsqrt.f32 %v723_v46 }
 0x8b2   :  { %v2392_v47 = vpop.eup %2391 }
 0x8b3   :  { %v726_v48 = vmul.f32 %v2392_v47, %v710_v28 }
 0x8b5   :  { %v732_v52 = vmul.f32 %v2045_v49, %v726_v48 }
 0x8b6   :  { %v2394_v50 = vpop.eup %2393 }
 0x8b7   :  { %v727_v53 = vmul.f32 %v2394_v50, %v711_v31  ;;  %v738_v56 = vadd.f32 %v2046_v54, %v732_v52 }
 0x8b9   :  { %v733_v55 = vmul.f32 %v2045_v49, %v727_v53 }
 0x8bb   :  { %v739_v57 = vadd.f32 %v2046_v54, %v733_v55 }
 0x8bd   :  { %v744_v58 = vpack.c.bf16 %v739_v57, %v738_v56 }
 0x8bf   :  { %2206 = vmatmul.mubr.msk.bf16.vlgmr.msra.gmra.mrb[8].mxu0 %vm254_vm2, %v744_v58 }
 0x8c0   :  { %2225 = vmatprep.mubr.msk.bf16.mxu0 %vm2473_vm4, %v2472_v44 }
 0x992   :  { %v799_v2 = vpop.f32.mrb[8].mxu0 }
 0x993   :  { %v800_v3 = vadd.f32 %v2047_v1, %v799_v2  ;;  %v2207_v4 = vpop.f32.mrb[9].mxu0 }
 0x994   :  { %v802_v6 = vpop.f32.mrb[10].mxu0 }
 0x995   :  { %v808_v9 = vmul.f32 0.70710677, %v800_v3  ;;  %v803_v10 = vadd.f32 %v2047_v1, %v802_v6  ;;  %v2208_v11 = vpop.f32.mrb[11].mxu0 }
 0x997   :  { %v814_v14 = vand.u32 2147483647, %v808_v9  ;;  %v809_v22 = vmul.f32 0.70710677, %v803_v10  ;;  %vm810_vm11 = vcmp.ge.f32.partialorder %v808_v9, 0.0 }
 0x998   :  { %v812_v62 = vsel %vm810_vm11, 1.0, %v2477_v61 }
 0x999   :  { %v816_v17 = vmul.f32 0.3275911, %v814_v14  ;;  %v815_v19 = vand.u32 2147483647, %v809_v22  ;;  %v842_v26 = vsub.f32 0.0, %v814_v14  ;;  %vm811_vm12 = vcmp.ge.f32.partialorder %v809_v22, 0.0 }
 0x99a   :  { %v813_v6 = vsel %vm811_vm12, 1.0, %v2477_v61  ;;  %v2056_v22 = vld [vmem:[%s3063_s4 + $0xd] ss:$0 sm:$0xff] }
 0x99b   :  { %v818_v21 = vadd.f32 1.0, %v816_v17  ;;  %v817_v23 = vmul.f32 0.3275911, %v815_v19  ;;  %v843_v27 = vsub.f32 0.0, %v815_v19  ;;  %v844_v29 = vmul.f32 %v842_v26, %v814_v14 }
 0x99c   :  { %v806_v17 = vmul.f32 0.5, %v800_v3 }
 0x99d   :  { %2395 = vrcp.f32 %v818_v21  ;;  %v819_v25 = vadd.f32 1.0, %v817_v23  ;;  %v845_v33 = vmul.f32 %v843_v27, %v815_v19  ;;  %v846_v34 = vmul.f32 1.442695, %v844_v29 }
 0x99e   :  { %v807_v19 = vmul.f32 0.5, %v803_v10 }
 0x99f   :  { %2397 = vrcp.f32 %v819_v25  ;;  %v848_v39 = vmul.f32 1.442695, %v845_v33 }
 0x9a0   :  { %2399 = vpow2.f32 %v846_v34 }
 0x9a1   :  { %2401 = vpow2.f32 %v848_v39 }
 0x9a7   :  { %v2396_v28 = vpop.eup %2395 }
 0x9a8   :  { %v824_v31 = vmul.f32 1.0614054, %v2396_v28 }
 0x9a9   :  { %v2398_v30 = vpop.eup %2397 }
 0x9aa   :  { %v826_v32 = vadd.f32 -1.4531521, %v824_v31  ;;  %v825_v35 = vmul.f32 1.0614054, %v2398_v30  ;;  %v2400_v55 = vpop.eup %2399 }
 0x9ab   :  { %v2402_v59 = vpop.eup %2401 }
 0x9ac   :  { %v828_v36 = vmul.f32 %v2396_v28, %v826_v32  ;;  %v827_v37 = vadd.f32 -1.4531521, %v825_v35 }
 0x9ae   :  { %v830_v38 = vadd.f32 1.4214138, %v828_v36  ;;  %v829_v40 = vmul.f32 %v2398_v30, %v827_v37 }
 0x9b0   :  { %v832_v45 = vmul.f32 %v2396_v28, %v830_v38  ;;  %v831_v46 = vadd.f32 1.4214138, %v829_v40 }
 0x9b2   :  { %v834_v47 = vadd.f32 -0.28449672, %v832_v45  ;;  %v833_v48 = vmul.f32 %v2398_v30, %v831_v46  ;;  %v2351_v46 = vld [vmem:[%s3062_s3 + $0x10] sm:$0xff]  }
 0x9b3   :  { %2222 = vmatpush3.bf16.msra.mxu0 %v2351_v46 }
 0x9b4   :  { %v836_v49 = vmul.f32 %v2396_v28, %v834_v47  ;;  %v835_v50 = vadd.f32 -0.28449672, %v833_v48  ;;  %2223 = vmatprep.subr.bf16.mxu0 %v2472_v44  ;;  %v2352_v47 = vld [vmem:[%s3062_s3 + $0x18] sm:$0xff]  }
 0x9b6   :  { %v838_v52 = vadd.f32 0.2548296, %v836_v49  ;;  %v837_v53 = vmul.f32 %v2398_v30, %v835_v50 }
 0x9b7   :  { %2224 = vmatpush3.bf16.msra.mxu0 %v2352_v47 }
 0x9b8   :  { %v840_v54 = vmul.f32 %v2396_v28, %v838_v52  ;;  %v839_v56 = vadd.f32 0.2548296, %v837_v53  ;;  %2243 = vmatprep.subr.bf16.mxu0 %v2472_v44 }
 0x9ba   :  { %v850_v57 = vmul.f32 %v2400_v55, %v840_v54  ;;  %v841_v58 = vmul.f32 %v2398_v30, %v839_v56 }
 0x9bc   :  { %v852_v60 = vsub.f32 1.0, %v850_v57  ;;  %v851_v1 = vmul.f32 %v2402_v59, %v841_v58  ;;  %v2057_v57 = vld [vmem:[%s3063_s4 + $0xe] ss:$0 sm:$0xff] }
 0x9be   :  { %v854_v2 = vmul.f32 %v852_v60, %v812_v62  ;;  %v853_v4 = vsub.f32 1.0, %v851_v1  ;;  %v2058_v62 = vld [vmem:[%s3063_s4 + $0xf] ss:$0 sm:$0xff] }
 0x9c0   :  { %v856_v11 = vadd.f32 1.0, %v854_v2  ;;  %v855_v14 = vmul.f32 %v853_v4, %v813_v6 }
 0x9c2   :  { %v857_v21 = vadd.f32 1.0, %v855_v14  ;;  %v858_v23 = vmul.f32 %v856_v11, %v806_v17  ;;  %v2059_v11 = vld [vmem:[%s3063_s4 + $0x10] ss:$0 sm:$0xff] }
 0x9c4   :  { %v859_v9 = vmul.f32 %v857_v21, %v807_v19 }
 0x9c6   :  { %v868_v25 = vpack.c.bf16 %v859_v9, %v858_v23 }
 0x9c8   :  { %2218 = vmatmul.mubr.msk.bf16.vlgmr.msra.gmra.mrb[28].mxu1 %vm3066_vm13, %v868_v25 }
 0x9c9   :  { %2231 = vmatprep.mubr.msk.bf16.mxu1 %vm2473_vm4, %v2472_v44 }
 0xa9b   :  { %v930_v26 = vpop.f32.mrb[28].mxu1 }
 0xa9c   :  { %v937_v27 = vadd.f32 %v930_v26, %v2746_v15  ;;  %v2219_v28 = vpop.f32.mrb[29].mxu1 }
 0xa9d   :  { %v933_v29 = vpop.f32.mrb[30].mxu1 }
 0xa9e   :  { %v2804_v3 = vadd.f32 %v2056_v22, %v937_v27  ;;  %v938_v10 = vadd.f32 %v933_v29, %v2749_v20  ;;  %v2220_v31 = vpop.f32.mrb[31].mxu1 }
 0xaa0   :  { %v2807_v30 = vadd.f32 %v2056_v22, %v938_v10  ;;  %v948_v32 = vsel %vm254_vm2, %v2804_v3, 0.0 }
 0xaa1   :  { %949 = vadd.xlane.f32.xlu0 %v948_v32 }
 0xaa2   :  { %v951_v33 = vsel %vm258_vm3, %v2807_v30, 0.0 }
 0xaa5   :  { %952 = vadd.xlane.f32.xlu0 %v951_v33 }
 0xb2e   :  { %v950_v34 = vpop.xlane.xlu0 %949 }
 0xb2f   :  { %v954_v35 = vmul.f32 0.03125, %v950_v34 }
 0xb31   :  { %v956_v15 = vsub.f32 %v2804_v3, %v954_v35 }
 0xb32   :  { %v953_v36 = vpop.xlane.xlu0 %952 }
 0xb33   :  { %v955_v37 = vmul.f32 0.03125, %v953_v36  ;;  %v958_v38 = vmul.f32 %v956_v15, %v956_v15 }
 0xb35   :  { %v957_v20 = vsub.f32 %v2807_v30, %v955_v37  ;;  %v960_v39 = vsel %vm254_vm2, %v958_v38, 0.0 }
 0xb36   :  { %961 = vadd.xlane.f32.xlu0 %v960_v39 }
 0xb37   :  { %v959_v40 = vmul.f32 %v957_v20, %v957_v20 }
 0xb39   :  { %v963_v45 = vsel %vm258_vm3, %v959_v40, 0.0 }
 0xb3a   :  { %964 = vadd.xlane.f32.xlu0 %v963_v45 }
 0xbc3   :  { %v962_v48 = vpop.xlane.xlu0 %961 }
 0xbc4   :  { %v966_v49 = vmul.f32 0.03125, %v962_v48 }
 0xbc6   :  { %v968_v50 = vadd.f32 1e-05, %v966_v49 }
 0xbc7   :  { %v965_v52 = vpop.xlane.xlu0 %964 }
 0xbc8   :  { %2403 = vrsqrt.f32 %v968_v50  ;;  %v967_v53 = vmul.f32 0.03125, %v965_v52 }
 0xbca   :  { %v969_v54 = vadd.f32 1e-05, %v967_v53 }
 0xbcc   :  { %2405 = vrsqrt.f32 %v969_v54 }
 0xbd2   :  { %v2404_v55 = vpop.eup %2403 }
 0xbd3   :  { %v972_v56 = vmul.f32 %v2404_v55, %v956_v15 }
 0xbd5   :  { %v978_v59 = vmul.f32 %v2057_v57, %v972_v56 }
 0xbd6   :  { %v2406_v58 = vpop.eup %2405 }
 0xbd7   :  { %v973_v60 = vmul.f32 %v2406_v58, %v957_v20  ;;  %v984_v2 = vadd.f32 %v2058_v62, %v978_v59 }
 0xbd9   :  { %v979_v1 = vmul.f32 %v2057_v57, %v973_v60 }
 0xbdb   :  { %v985_v4 = vadd.f32 %v2058_v62, %v979_v1 }
 0xbdd   :  { %v990_v6 = vpack.c.bf16 %v985_v4, %v984_v2 }
 0xbdf   :  { %2226 = vmatmul.mubr.msk.bf16.vlgmr.msra.gmra.mrb[12].mxu0 %vm254_vm2, %v990_v6 }
 0xbe0   :  { %2245 = vmatprep.mubr.msk.bf16.mxu0 %vm2473_vm4, %v2472_v44 }
 0xcb2   :  { %v1045_v14 = vpop.f32.mrb[12].mxu0 }
 0xcb3   :  { %v1046_v17 = vadd.f32 %v2059_v11, %v1045_v14  ;;  %v2227_v19 = vpop.f32.mrb[13].mxu0 }
 0xcb4   :  { %v1048_v21 = vpop.f32.mrb[14].mxu0 }
 0xcb5   :  { %v1054_v23 = vrot.slane %v1046_v17, 6  ;;  %v2228_v9 = vpop.f32.mrb[15].mxu0  ;;  %v1049_v25 = vadd.f32 %v2059_v11, %v1048_v21  ;;  %v1059_v26 = vrot.slane %v1046_v17, 4  ;;  %v1064_v22 = vrot.slane %v1046_v17, 2 }
 0xcb6   :  { %v1072_v31 = vmul.f32 %v2618_v8, %v1046_v17 }
 0xcb7   :  { %v1055_v27 = vrot.slane %v1049_v25, 6  ;;  %v1060_v28 = vrot.slane %v1049_v25, 4  ;;  %v1065_v29 = vrot.slane %v1049_v25, 2  ;;  %v1069_v10 = vsel %vm44_vm14, %v1049_v25, %v1054_v23 }
 0xcb8   :  { %v2839_v32 = vpack.c.bf16 %v1049_v25, %v1046_v17  ;;  %v1073_v33 = vmul.f32 %v1069_v10, %v2622_v12 }
 0xcb9   :  { %v1056_v34 = vsel %vm44_vm14, %v1054_v23, %v1055_v27  ;;  %v1061_v35 = vsel %vm46_vm0, %v1059_v26, %v1060_v28  ;;  %v1066_v15 = vsel %vm48_vm5, %v1064_v22, %v1065_v29 }
 0xcba   :  { %1082 = vrot.lane.b32.xlu0 %v2839_v32, %s2474_s13  ;;  %v1077_v36 = vpack.c.bf16 %v1073_v33, %v1072_v31  ;;  %v1070_v37 = vsel %vm46_vm0, %v1056_v34, %v1059_v26  ;;  %v1071_v38 = vsel %vm48_vm5, %v1061_v35, %v1064_v22  ;;  %v1076_v47 = vmul.f32 %v2625_v13, %v1066_v15 }
 0xcbb   :  { %v1074_v20 = vmul.f32 %v1070_v37, %v2629_v16  ;;  %v1075_v39 = vmul.f32 %v1071_v38, %v2639_v24 }
 0xcbc   :  { %v1079_v48 = vpack.c.bf16 %v1076_v47, %v1076_v47 }
 0xcbd   :  { %v1078_v40 = vpack.c.bf16 %v1075_v39, %v1074_v20 }
 0xd2c   :  { %v1083_v45 = vpop.permute.xlu0 %1082 }
 0xd2d   :  { %v1094_v46 = vsel %vm254_vm2, %v1083_v45, 0 }
 0xd2e   :  { %2230 = vmatpush3.bf16.xpose.msra.mxu1 %v1094_v46 }
 0xd2f   :  { %2257 = vmatprep.subr.bf16.mxu1 %v2472_v44 }
 0xd35   :  { %2232 = vmatmul.mubr.msk.bf16.vlgmr.msra.gmra.mrb[32].mxu1 %vm254_vm2, %v1077_v36 }
 0xd36   :  { %2235 = vmatprep.mubr.msk.bf16.mxu1 %vm2473_vm4, %v2472_v44 }
 0xd3d   :  { %2236 = vmatmul.mubr.msk.bf16.gmra.mrb[36].mxu1 %vm254_vm2, %v1078_v40 }
 0xd3e   :  { %2239 = vmatprep.mubr.msk.bf16.mxu1 %vm2473_vm4, %v2472_v44 }
 0xd45   :  { %2240 = vmatmul.mubr.msk.bf16.gmra.mrb[40].mxu1 %vm254_vm2, %v1079_v48 }
 0xd46   :  { %2261 = vmatprep.mubr.msk.bf16.mxu1 %vm2473_vm4, %v2472_v44 }
 0xe08   :  { %v1130_v49 = vpop.f32.mrb[32].mxu1 }
 0xe09   :  { %v1152_v50 = vmul.f32 0.35355338, %v1130_v49  ;;  %v2233_v52 = vpop.f32.mrb[33].mxu1 }
 0xe0a   :  { %v1133_v53 = vpop.f32.mrb[34].mxu1 }
 0xe0b   :  { %v1153_v54 = vmul.f32 0.35355338, %v1133_v53  ;;  %v2234_v55 = vpop.f32.mrb[35].mxu1  ;;  %v1157_v56 = vadd.f32 %v1152_v50, %v2672_v43 }
 0xe0d   :  { %v1162_v57 = vsel %vm471_vm10, %v1157_v56, -inf  ;;  %v1158_v58 = vadd.f32 %v1153_v54, %v2678_v51 }
 0xe0e   :  { %1163 = vmax.xlane.f32.xlu1 %v1162_v57 }
 0xe0f   :  { %v1165_v1 = vsel %vm471_vm10, %v1158_v58, -inf }
 0xe10   :  { %v1138_v59 = vpop.f32.mrb[36].mxu1 }
 0xe11   :  { %v1154_v60 = vmul.f32 0.35355338, %v1138_v59  ;;  %v2237_v62 = vpop.f32.mrb[37].mxu1 }
 0xe12   :  { %1166 = vmax.xlane.f32.xlu1 %v1165_v1  ;;  %v1141_v2 = vpop.f32.mrb[38].mxu1 }
 0xe13   :  { %v1155_v4 = vmul.f32 0.35355338, %v1141_v2  ;;  %v2238_v6 = vpop.f32.mrb[39].mxu1  ;;  %v1159_v11 = vadd.f32 %v1154_v60, %v2689_v0 }
 0xe15   :  { %v1168_v14 = vsel %vm471_vm10, %v1159_v11, -inf  ;;  %v1160_v43 = vadd.f32 %v1155_v4, %v2693_v5 }
 0xe16   :  { %1169 = vmax.xlane.f32.xlu1 %v1168_v14 }
 0xe17   :  { %v1171_v21 = vsel %vm471_vm10, %v1160_v43, -inf }
 0xe18   :  { %v1146_v17 = vpop.f32.mrb[40].mxu1 }
 0xe19   :  { %v1156_v19 = vmul.f32 0.35355338, %v1146_v17  ;;  %v2241_v51 = vpop.f32.mrb[41].mxu1 }
 0xe1a   :  { %1172 = vmax.xlane.f32.xlu1 %v1171_v21  ;;  %v1149_v23 = vpop.f32.mrb[42].mxu1  ;;  %v2353_v51 = vld [vmem:[%s3060_s1 + $0x70] sm:$0xff]   ;;  %v2354_v21 = vld [vmem:[%s3060_s1 + $0x78] sm:$0xff]  }
 0xe1b   :  { %v2242_v9 = vpop.f32.mrb[43].mxu1  ;;  %v1161_v25 = vadd.f32 %v1156_v19, %v2700_v18  ;;  %2258 = vmatpush3.bf16.msra.mxu1 %v2353_v51  ;;  %v2355_v51 = vld [vmem:[%s3061_s2 + $0x10] sm:$0xff]  }
 0xe1c   :  { %2259 = vmatprep.subr.bf16.mxu1 %v2472_v44 }
 0xe1d   :  { %v1174_v26 = vsel %vm471_vm10, %v1161_v25, -inf }
 0xe1e   :  { %1175 = vmax.xlane.f32.xlu0 %v1174_v26 }
 0xe1f   :  { %2260 = vmatpush3.bf16.msra.mxu1 %v2354_v21  ;;  %v2356_v21 = vld [vmem:[%s3061_s2 + $0x18] sm:$0xff]  }
 0xe20   :  { %2273 = vmatprep.subr.bf16.mxu1 %v2472_v44 }
 0xe9b   :  { %v1164_v22 = vpop.xlane.xlu1 %1163 }
 0xe9c   :  { %v1177_v0 = vsub.f32 %v1157_v56, %v1164_v22 }
 0xe9e   :  { %v1182_v27 = vmul.f32 1.442695, %v1177_v0 }
 0xe9f   :  { %v1167_v28 = vpop.xlane.xlu1 %1166 }
 0xea0   :  { %2407 = vpow2.f32 %v1182_v27  ;;  %v1178_v5 = vsub.f32 %v1158_v58, %v1167_v28 }
 0xea2   :  { %v1184_v29 = vmul.f32 1.442695, %v1178_v5 }
 0xea3   :  { %v1170_v10 = vpop.xlane.xlu1 %1169 }
 0xea4   :  { %2409 = vpow2.f32 %v1184_v29  ;;  %v1179_v31 = vsub.f32 %v1159_v11, %v1170_v10 }
 0xea6   :  { %v1186_v33 = vmul.f32 1.442695, %v1179_v31 }
 0xea7   :  { %v1173_v34 = vpop.xlane.xlu1 %1172 }
 0xea8   :  { %2411 = vpow2.f32 %v1186_v33  ;;  %v1180_v35 = vsub.f32 %v1160_v43, %v1173_v34 }
 0xeaa   :  { %v2408_v15 = vpop.eup %2407  ;;  %v1188_v36 = vmul.f32 1.442695, %v1180_v35 }
 0xeab   :  { %v1176_v18 = vpop.xlane.xlu0 %1175  ;;  %v1192_v37 = vsel %vm471_vm10, %v2408_v15, 0.0 }
 0xeac   :  { %2413 = vpow2.f32 %v1188_v36  ;;  %v1181_v38 = vsub.f32 %v1161_v25, %v1176_v18  ;;  %1193 = vadd.xlane.f32.xlu1 %v1192_v37 }
 0xeae   :  { %v2410_v20 = vpop.eup %2409  ;;  %v1190_v39 = vmul.f32 1.442695, %v1181_v38 }
 0xeaf   :  { %v1195_v40 = vsel %vm471_vm10, %v2410_v20, 0.0 }
 0xeb0   :  { %2415 = vpow2.f32 %v1190_v39  ;;  %1196 = vadd.xlane.f32.xlu1 %v1195_v40 }
 0xeb2   :  { %v2412_v45 = vpop.eup %2411 }
 0xeb3   :  { %v1198_v46 = vsel %vm471_vm10, %v2412_v45, 0.0 }
 0xeb4   :  { %1199 = vadd.xlane.f32.xlu1 %v1198_v46 }
 0xeb6   :  { %v2414_v47 = vpop.eup %2413 }
 0xeb7   :  { %v1201_v48 = vsel %vm471_vm10, %v2414_v47, 0.0 }
 0xeb8   :  { %1202 = vadd.xlane.f32.xlu1 %v1201_v48 }
 0xeba   :  { %v2416_v49 = vpop.eup %2415 }
 0xebb   :  { %v1204_v50 = vsel %vm471_vm10, %v2416_v49, 0.0 }
 0xebc   :  { %1205 = vadd.xlane.f32.xlu1 %v1204_v50 }
 0xecd   :  { %1220 = vrot.lane.b32.xlu1 %v2839_v32, %s2476_s14 }
 0xf39   :  { %v1194_v52 = vpop.xlane.xlu1 %1193 }
 0xf3d   :  { %v1197_v53 = vpop.xlane.xlu1 %1196 }
 0xf3e   :  { %2417 = vrcp.f32 %v1197_v53 }
 0xf3f   :  { %2419 = vrcp.f32 %v1194_v52 }
 0xf41   :  { %v1200_v54 = vpop.xlane.xlu1 %1199 }
 0xf45   :  { %v1203_v55 = vpop.xlane.xlu1 %1202 }
 0xf46   :  { %2421 = vrcp.f32 %v1203_v55 }
 0xf47   :  { %2423 = vrcp.f32 %v1200_v54  ;;  %v2072_v54 = vld [vmem:[%s3063_s4 + $0x11] ss:$0 sm:$0xff] }
 0xf48   :  { %v2418_v56 = vpop.eup %2417 }
 0xf49   :  { %v1206_v57 = vpop.xlane.xlu1 %1205  ;;  %v2420_v58 = vpop.eup %2419  ;;  %v1210_v59 = vmul.f32 %v2418_v56, %v2410_v20 }
 0xf4a   :  { %v1208_v62 = vmul.f32 %v2420_v58, %v2408_v15  ;;  %2425 = vrcp.f32 %v1206_v57 }
 0xf4c   :  { %v1217_v2 = vpack.c.bf16 %v1210_v59, %v1208_v62 }
 0xf4d   :  { %v1221_v60 = vpop.permute.xlu1 %1220 }
 0xf4e   :  { %v1232_v1 = vsel %vm58_vm1, %v1221_v60, 0 }
 0xf4f   :  { %2244 = vmatpush3.bf16.msra.mxu0 %v1232_v1 }
 0xf50   :  { %2265 = vmatprep.subr.bf16.mxu0 %v2472_v44  ;;  %v2422_v32 = vpop.eup %2421 }
 0xf51   :  { %v2424_v4 = vpop.eup %2423  ;;  %v1214_v6 = vmul.f32 %v2422_v32, %v2414_v47 }
 0xf52   :  { %2246 = vmatmul.mubr.msk.bf16.vlgmr.msra.gmra.mrb[16].mxu0 %vm471_vm10, %v1217_v2  ;;  %v1212_v11 = vmul.f32 %v2424_v4, %v2412_v45 }
 0xf53   :  { %2249 = vmatprep.mubr.msk.bf16.mxu0 %vm2473_vm4, %v2472_v44  ;;  %2266 = vmatpush3.bf16.msra.mxu0 %v2355_v51 }
 0xf54   :  { %v1218_v14 = vpack.c.bf16 %v1214_v6, %v1212_v11  ;;  %v2426_v43 = vpop.eup %2425  ;;  %2267 = vmatprep.subr.bf16.mxu0 %v2472_v44 }
 0xf55   :  { %v1216_v17 = vmul.f32 %v2426_v43, %v2416_v49 }
 0xf57   :  { %v1219_v19 = vpack.c.bf16 %v1216_v17, %v1216_v17  ;;  %2268 = vmatpush3.bf16.msra.mxu0 %v2356_v21 }
 0xf58   :  { %2285 = vmatprep.subr.bf16.mxu0 %v2472_v44 }
 0xf5a   :  { %2250 = vmatmul.mubr.msk.bf16.gmra.mrb[20].mxu0 %vm471_vm10, %v1218_v14 }
 0xf5b   :  { %2253 = vmatprep.mubr.msk.bf16.mxu0 %vm2473_vm4, %v2472_v44 }
 0xf62   :  { %2254 = vmatmul.mubr.msk.bf16.gmra.mrb[24].mxu0 %vm471_vm10, %v1219_v19 }
 0xf63   :  { %2269 = vmatprep.mubr.msk.bf16.mxu0 %vm2473_vm4, %v2472_v44 }
0x1025   :  { %v1268_v23 = vpop.f32.mrb[16].mxu0 }
0x1026   :  { %v2247_v9 = vpop.f32.mrb[17].mxu0  ;;  %v1290_v34 = vmul.f32 %v2618_v8, %v1268_v23 }
0x1027   :  { %v1271_v25 = vpop.f32.mrb[18].mxu0 }
0x1028   :  { %v2248_v26 = vpop.f32.mrb[19].mxu0  ;;  %v1291_v22 = vmul.f32 %v1271_v25, %v2622_v12 }
0x102a   :  { %v1297_v29 = vrot.slane %v1291_v22, 2 }
0x102d   :  { %v1276_v0 = vpop.f32.mrb[20].mxu0 }
0x102e   :  { %v1292_v27 = vmul.f32 %v1276_v0, %v2629_v16  ;;  %v2251_v28 = vpop.f32.mrb[21].mxu0 }
0x102f   :  { %v1279_v5 = vpop.f32.mrb[22].mxu0 }
0x1030   :  { %v1298_v10 = vrot.slane %v1292_v27, 2  ;;  %v1293_v31 = vmul.f32 %v1279_v5, %v2639_v24  ;;  %v2252_v33 = vpop.f32.mrb[23].mxu0  ;;  %v1305_v36 = vrot.slane %v1292_v27, 4  ;;  %v2073_v5 = vld [vmem:[%s3063_s4 + $0x12] ss:$0 sm:$0xff] }
0x1031   :  { %v2074_v33 = vld [vmem:[%s3063_s4 + $0x13] ss:$0 sm:$0xff] }
0x1032   :  { %v1299_v35 = vsel %vm48_vm5, %v1297_v29, %v1298_v10  ;;  %v1303_v15 = vadd.f32 %v1298_v10, %v1291_v22  ;;  %v1306_v18 = vrot.slane %v1293_v31, 4  ;;  %v1313_v47 = vrot.slane %v1293_v31, 6 }
0x1033   :  { %v1302_v37 = vadd.f32 %v1299_v35, %v1290_v34 }
0x1034   :  { %v1307_v38 = vsel %vm46_vm0, %v1305_v36, %v1306_v18  ;;  %v1311_v20 = vadd.f32 %v1306_v18, %v1303_v15  ;;  %v2357_v18 = vld [vmem:[%s3060_s1 + $0xa0] sm:$0xff]  }
0x1035   :  { %v1310_v39 = vadd.f32 %v1307_v38, %v1302_v37  ;;  %v1284_v16 = vpop.f32.mrb[24].mxu0  ;;  %v2358_v37 = vld [vmem:[%s3060_s1 + $0xa8] sm:$0xff]   ;;  %v2359_v38 = vld [vmem:[%s3060_s1 + $0xb0] sm:$0xff]  }
0x1036   :  { %v1294_v40 = vmul.f32 %v2625_v13, %v1284_v16  ;;  %v2255_v45 = vpop.f32.mrb[25].mxu0 }
0x1037   :  { %v1287_v46 = vpop.f32.mrb[26].mxu0 }
0x1038   :  { %v1314_v24 = vrot.slane %v1294_v40, 6  ;;  %v2256_v48 = vpop.f32.mrb[27].mxu0 }
0x103a   :  { %v1315_v8 = vsel %vm44_vm14, %v1313_v47, %v1314_v24  ;;  %v1319_v49 = vadd.f32 %v1314_v24, %v1311_v20  ;;  %v2360_v20 = vld [vmem:[%s3060_s1 + $0xb8] sm:$0xff]  }
0x103b   :  { %v1318_v50 = vadd.f32 %v1315_v8, %v1310_v39  ;;  %v2075_v39 = vld [vmem:[%s3063_s4 + $0x14] ss:$0 sm:$0xff] }
0x103d   :  { %v1324_v52 = vpack.c.bf16 %v1319_v49, %v1318_v50 }
0x103f   :  { %2262 = vmatmul.mubr.msk.bf16.vlgmr.msra.gmra.mrb[44].mxu1 %vm254_vm2, %v1324_v52 }
0x1040   :  { %2281 = vmatprep.mubr.msk.bf16.mxu1 %vm2473_vm4, %v2472_v44  ;;  %2274 = vmatpush3.bf16.msra.mxu1 %v2357_v18 }
0x1041   :  { %2275 = vmatprep.subr.bf16.mxu1 %v2472_v44 }
0x1044   :  { %2276 = vmatpush3.bf16.msra.mxu1 %v2358_v37 }
0x1045   :  { %2277 = vmatprep.subr.bf16.mxu1 %v2472_v44 }
0x1048   :  { %2278 = vmatpush3.bf16.msra.mxu1 %v2359_v38 }
0x1049   :  { %2279 = vmatprep.subr.bf16.mxu1 %v2472_v44 }
0x104c   :  { %2280 = vmatpush3.bf16.msra.mxu1 %v2360_v20 }
0x104d   :  { %2301 = vmatprep.subr.bf16.mxu1 %v2472_v44 }
0x1112   :  { %v1374_v53 = vpop.f32.mrb[44].mxu1 }
0x1113   :  { %v1381_v55 = vadd.f32 %v1374_v53, %v2804_v3  ;;  %v2263_v56 = vpop.f32.mrb[45].mxu1 }
0x1114   :  { %v1377_v57 = vpop.f32.mrb[46].mxu1 }
0x1115   :  { %v2914_v58 = vadd.f32 %v2072_v54, %v1381_v55  ;;  %v1382_v59 = vadd.f32 %v1377_v57, %v2807_v30  ;;  %v2264_v60 = vpop.f32.mrb[47].mxu1 }
0x1117   :  { %v2917_v62 = vadd.f32 %v2072_v54, %v1382_v59  ;;  %v1392_v1 = vsel %vm254_vm2, %v2914_v58, 0.0 }
0x1118   :  { %1393 = vadd.xlane.f32.xlu0 %v1392_v1 }
0x1119   :  { %v1395_v2 = vsel %vm258_vm3, %v2917_v62, 0.0 }
0x111c   :  { %1396 = vadd.xlane.f32.xlu0 %v1395_v2 }
0x11a5   :  { %v1394_v32 = vpop.xlane.xlu0 %1393 }
0x11a6   :  { %v1398_v4 = vmul.f32 0.03125, %v1394_v32 }
0x11a8   :  { %v1400_v3 = vsub.f32 %v2914_v58, %v1398_v4 }
0x11a9   :  { %v1397_v6 = vpop.xlane.xlu0 %1396 }
0x11aa   :  { %v1399_v11 = vmul.f32 0.03125, %v1397_v6  ;;  %v1402_v14 = vmul.f32 %v1400_v3, %v1400_v3 }
0x11ac   :  { %v1401_v30 = vsub.f32 %v2917_v62, %v1399_v11  ;;  %v1404_v43 = vsel %vm254_vm2, %v1402_v14, 0.0 }
0x11ad   :  { %1405 = vadd.xlane.f32.xlu0 %v1404_v43 }
0x11ae   :  { %v1403_v17 = vmul.f32 %v1401_v30, %v1401_v30 }
0x11b0   :  { %v1407_v19 = vsel %vm258_vm3, %v1403_v17, 0.0 }
0x11b1   :  { %1408 = vadd.xlane.f32.xlu1 %v1407_v19 }
0x123a   :  { %v1406_v23 = vpop.xlane.xlu0 %1405 }
0x123b   :  { %v1410_v9 = vmul.f32 0.03125, %v1406_v23 }
0x123d   :  { %v1412_v25 = vadd.f32 1e-05, %v1410_v9 }
0x123e   :  { %v1409_v26 = vpop.xlane.xlu1 %1408 }
0x123f   :  { %2427 = vrsqrt.f32 %v1412_v25  ;;  %v1411_v22 = vmul.f32 0.03125, %v1409_v26 }
0x1241   :  { %v1413_v0 = vadd.f32 1e-05, %v1411_v22 }
0x1243   :  { %2429 = vrsqrt.f32 %v1413_v0 }
0x1249   :  { %v2428_v27 = vpop.eup %2427 }
0x124a   :  { %v1416_v28 = vmul.f32 %v2428_v27, %v1400_v3 }
0x124c   :  { %v1422_v10 = vmul.f32 %v2073_v5, %v1416_v28 }
0x124d   :  { %v2430_v29 = vpop.eup %2429 }
0x124e   :  { %v1417_v31 = vmul.f32 %v2430_v29, %v1401_v30  ;;  %v1428_v35 = vadd.f32 %v2074_v33, %v1422_v10 }
0x1250   :  { %v1423_v34 = vmul.f32 %v2073_v5, %v1417_v31 }
0x1252   :  { %v1429_v15 = vadd.f32 %v2074_v33, %v1423_v34 }
0x1254   :  { %v1434_v36 = vpack.c.bf16 %v1429_v15, %v1428_v35 }
0x1256   :  { %2270 = vmatmul.mubr.msk.bf16.vlgmr.msra.gmra.mrb[28].mxu0 %vm254_vm2, %v1434_v36 }
0x1257   :  { %2289 = vmatprep.mubr.msk.bf16.mxu0 %vm2473_vm4, %v2472_v44 }
0x1329   :  { %v1489_v16 = vpop.f32.mrb[28].mxu0 }
0x132a   :  { %v1490_v40 = vadd.f32 %v2075_v39, %v1489_v16  ;;  %v2271_v45 = vpop.f32.mrb[29].mxu0 }
0x132b   :  { %v1492_v46 = vpop.f32.mrb[30].mxu0 }
0x132c   :  { %v1498_v47 = vmul.f32 0.70710677, %v1490_v40  ;;  %v1493_v24 = vadd.f32 %v2075_v39, %v1492_v46  ;;  %v2272_v48 = vpop.f32.mrb[31].mxu0  ;;  %v1496_v38 = vmul.f32 0.5, %v1490_v40 }
0x132d   :  { %v2084_v48 = vld [vmem:[%s3063_s4 + $0x15] ss:$0 sm:$0xff] }
0x132e   :  { %v1504_v8 = vand.u32 2147483647, %v1498_v47  ;;  %v1499_v49 = vmul.f32 0.70710677, %v1493_v24  ;;  %vm1500_vm15 = vcmp.ge.f32.partialorder %v1498_v47, 0.0  ;;  %v1497_v20 = vmul.f32 0.5, %v1493_v24 }
0x132f   :  { %v1502_v33 = vsel %vm1500_vm15, 1.0, %v2477_v61 }
0x1330   :  { %v1506_v50 = vmul.f32 0.3275911, %v1504_v8  ;;  %v1505_v52 = vand.u32 2147483647, %v1499_v49  ;;  %v1532_v56 = vsub.f32 0.0, %v1504_v8  ;;  %vm1501_vm6 = vcmp.ge.f32.partialorder %v1499_v49, 0.0 }
0x1331   :  { %v1503_v36 = vsel %vm1501_vm6, 1.0, %v2477_v61 }
0x1332   :  { %v1508_v53 = vadd.f32 1.0, %v1506_v50  ;;  %v1507_v54 = vmul.f32 0.3275911, %v1505_v52  ;;  %v1533_v57 = vsub.f32 0.0, %v1505_v52  ;;  %v1534_v60 = vmul.f32 %v1532_v56, %v1504_v8 }
0x1334   :  { %2431 = vrcp.f32 %v1508_v53  ;;  %v1509_v55 = vadd.f32 1.0, %v1507_v54  ;;  %v1535_v4 = vmul.f32 %v1533_v57, %v1505_v52  ;;  %v1536_v3 = vmul.f32 1.442695, %v1534_v60 }
0x1336   :  { %2433 = vrcp.f32 %v1509_v55  ;;  %v1538_v43 = vmul.f32 1.442695, %v1535_v4  ;;  %v2361_v4 = vld [vmem:[%s3060_s1 + $0xc0] sm:$0xff]  }
0x1337   :  { %2435 = vpow2.f32 %v1536_v3  ;;  %2286 = vmatpush3.bf16.msra.mxu0 %v2361_v4  ;;  %v2362_v3 = vld [vmem:[%s3060_s1 + $0xc8] sm:$0xff]  }
0x1338   :  { %2437 = vpow2.f32 %v1538_v43  ;;  %2287 = vmatprep.subr.bf16.mxu0 %v2472_v44 }
0x133b   :  { %2288 = vmatpush3.bf16.msra.mxu0 %v2362_v3 }
0x133c   :  { %2293 = vmatprep.subr.bf16.mxu0 %v2472_v44 }
0x133e   :  { %v2432_v59 = vpop.eup %2431 }
0x133f   :  { %v1514_v1 = vmul.f32 1.0614054, %v2432_v59 }
0x1340   :  { %v2434_v2 = vpop.eup %2433 }
0x1341   :  { %v1516_v32 = vadd.f32 -1.4531521, %v1514_v1  ;;  %v1515_v6 = vmul.f32 1.0614054, %v2434_v2  ;;  %v2436_v27 = vpop.eup %2435 }
0x1342   :  { %v2438_v10 = vpop.eup %2437 }
0x1343   :  { %v1518_v11 = vmul.f32 %v2432_v59, %v1516_v32  ;;  %v1517_v14 = vadd.f32 -1.4531521, %v1515_v6  ;;  %v1676_v6 = vld [vmem:[%s3063_s4 + $0x18] sm:$0x1] }
0x1345   :  { %v1520_v30 = vadd.f32 1.4214138, %v1518_v11  ;;  %v1519_v17 = vmul.f32 %v2434_v2, %v1517_v14  ;;  %v1681_v11 = vpack.c.bf16 %v1676_v6, %v1676_v6  ;;  %v2363_v14 = vld [vmem:[%s3061_s2 + $0x20] sm:$0xff]  }
0x1347   :  { %v1522_v19 = vmul.f32 %v2432_v59, %v1520_v30  ;;  %v1521_v51 = vadd.f32 1.4214138, %v1519_v17  ;;  %2290 = vmatmul.mubr.msk.bf16.vlgmr.msra.gmra.mrb[32].mxu0 %vm254_vm2, %v1681_v11  ;;  %v2364_v30 = vld [vmem:[%s3061_s2 + $0x28] sm:$0xff]  }
0x1348   :  { %2297 = vmatprep.mubr.msk.bf16.mxu0 %vm2473_vm4, %v2472_v44  ;;  %2294 = vmatpush3.bf16.msra.mxu0 %v2363_v14 }
0x1349   :  { %v1524_v21 = vadd.f32 -0.28449672, %v1522_v19  ;;  %v1523_v23 = vmul.f32 %v2434_v2, %v1521_v51  ;;  %2295 = vmatprep.subr.bf16.mxu0 %v2472_v44 }
0x134b   :  { %v1526_v9 = vmul.f32 %v2432_v59, %v1524_v21  ;;  %v1525_v25 = vadd.f32 -0.28449672, %v1523_v23 }
0x134c   :  { %2296 = vmatpush3.bf16.msra.mxu0 %v2364_v30 }
0x134d   :  { %v1528_v26 = vadd.f32 0.2548296, %v1526_v9  ;;  %v1527_v22 = vmul.f32 %v2434_v2, %v1525_v25  ;;  %2307 = vmatprep.subr.bf16.mxu0 %v2472_v44 }
0x134f   :  { %v1530_v0 = vmul.f32 %v2432_v59, %v1528_v26  ;;  %v1529_v28 = vadd.f32 0.2548296, %v1527_v22  ;;  %v2085_v26 = vld [vmem:[%s3063_s4 + $0x16] ss:$0 sm:$0xff] }
0x1351   :  { %v1540_v5 = vmul.f32 %v2436_v27, %v1530_v0  ;;  %v1531_v29 = vmul.f32 %v2434_v2, %v1529_v28  ;;  %v2086_v28 = vld [vmem:[%s3063_s4 + $0x17] ss:$0 sm:$0xff] }
0x1353   :  { %v1542_v31 = vsub.f32 1.0, %v1540_v5  ;;  %v1541_v34 = vmul.f32 %v2438_v10, %v1531_v29 }
0x1355   :  { %v1544_v35 = vmul.f32 %v1542_v31, %v1502_v33  ;;  %v1543_v15 = vsub.f32 1.0, %v1541_v34 }
0x1357   :  { %v1546_v18 = vadd.f32 1.0, %v1544_v35  ;;  %v1545_v37 = vmul.f32 %v1543_v15, %v1503_v36  ;;  %v1739_v36 = vshrl.u32 %v22_v63, 7 }
0x1359   :  { %v1547_v39 = vadd.f32 1.0, %v1545_v37  ;;  %v1548_v16 = vmul.f32 %v1546_v18, %v1496_v38  ;;  %v1682_v18 = vld [vmem:[%s3063_s4 + $0x19] sm:$0x1]  ;;  %v2090_v37 = vld [vmem:[%s3063_s4 + $0x1a] ss:$0 sm:$0xff] }
0x135b   :  { %v1549_v45 = vmul.f32 %v1547_v39, %v1497_v20  ;;  %v1740_v39 = vsub.s32 0, %v1739_v36 }
0x135d   :  { %v1558_v46 = vpack.c.bf16 %v1549_v45, %v1548_v16 }
0x135f   :  { %2282 = vmatmul.mubr.msk.bf16.vlgmr.msra.gmra.mrb[48].mxu1 %vm3067_vm7, %v1558_v46  ;;  %v79_v46 = vsel %vm46_vm0, %v2622_v12, %v2615_v7  ;;  %v82_v7 = vsel %vm81_vm8, %v2665_v41, %v2667_v42 }
0x1360   :  { %2303 = vmatprep.mubr.msk.bf16.mxu1 %vm2473_vm4, %v2472_v44  ;;  %v84_v12 = vrot.slane %v82_v7, 6 }
0x141a   :  { %v1732_v33 = vpop.f32.mrb[32].mxu0 }
0x141b   :  { %v2291_v34 = vpop.f32.mrb[33].mxu0  ;;  %v1733_v20 = vadd.f32 %v1732_v33, %v1682_v18 }
0x141c   :  { %v1735_v35 = vpop.f32.mrb[34].mxu0 }
0x141d   :  { %v2292_v15 = vpop.f32.mrb[35].mxu0 }
0x1432   :  { %v1620_v47 = vpop.f32.mrb[48].mxu1 }
0x1433   :  { %v1627_v61 = vadd.f32 %v1620_v47, %v2914_v58  ;;  %v2283_v8 = vpop.f32.mrb[49].mxu1 }
0x1434   :  { %v1623_v49 = vpop.f32.mrb[50].mxu1 }
0x1435   :  { %v1628_v40 = vadd.f32 %v1623_v49, %v2917_v62  ;;  %v2284_v24 = vpop.f32.mrb[51].mxu1  ;;  %v1634_v50 = vadd.f32 %v2084_v48, %v1627_v61  ;;  %v1741_v61 = vrot.slane %v1733_v20, %v1740_v39  ;;  %v80_v49 = vsel %vm48_vm5, %v79_v46, %v2625_v13 }
0x1436   :  { %v90_v13 = vsel %vm44_vm14, %v82_v7, %v84_v12 }
0x1437   :  { %v1638_v52 = vsel %vm254_vm2, %v1634_v50, 0.0  ;;  %v1635_v53 = vadd.f32 %v2084_v48, %v1628_v40  ;;  %v1808_v24 = vmul.f32 %v1741_v61, %v80_v49 }
0x1438   :  { %1639 = vadd.xlane.f32.xlu0 %v1638_v52  ;;  %v86_v52 = vrot.slane %v82_v7, 4 }
0x1439   :  { %v1641_v54 = vsel %vm258_vm3, %v1635_v53, 0.0 }
0x143c   :  { %1642 = vadd.xlane.f32.xlu0 %v1641_v54  ;;  %v91_v54 = vsel %vm46_vm0, %v90_v13, %v86_v52 }
0x14c5   :  { %v1640_v55 = vpop.xlane.xlu0 %1639 }
0x14c6   :  { %v1644_v56 = vmul.f32 0.03125, %v1640_v55 }
0x14c8   :  { %v1646_v57 = vsub.f32 %v1634_v50, %v1644_v56  ;;  %v1809_v50 = vpack.c.bf16 %v1808_v24, %v1808_v24 }
0x14c9   :  { %v1643_v59 = vpop.xlane.xlu0 %1642 }
0x14ca   :  { %v1645_v60 = vmul.f32 0.03125, %v1643_v59  ;;  %v1648_v1 = vmul.f32 %v1646_v57, %v1646_v57 }
0x14cc   :  { %v1647_v58 = vsub.f32 %v1635_v53, %v1645_v60  ;;  %v1650_v2 = vsel %vm254_vm2, %v1648_v1, 0.0  ;;  %v88_v53 = vrot.slane %v82_v7, 2 }
0x14cd   :  { %1651 = vadd.xlane.f32.xlu0 %v1650_v2 }
0x14ce   :  { %v1649_v62 = vmul.f32 %v1647_v58, %v1647_v58  ;;  %v92_v56 = vsel %vm48_vm5, %v91_v54, %v88_v53 }
0x14d0   :  { %v1653_v32 = vsel %vm258_vm3, %v1649_v62, 0.0 }
0x14d1   :  { %1654 = vadd.xlane.f32.xlu0 %v1653_v32 }
0x155a   :  { %v1652_v43 = vpop.xlane.xlu0 %1651 }
0x155b   :  { %v1656_v17 = vmul.f32 0.03125, %v1652_v43 }
0x155d   :  { %v1658_v19 = vadd.f32 1e-05, %v1656_v17  ;;  %v2365_v17 = vld [vmem:[%s3060_s1 + $0xd0] sm:$0xff]  }
0x155e   :  { %v1655_v51 = vpop.xlane.xlu0 %1654 }
0x155f   :  { %2439 = vrsqrt.f32 %v1658_v19  ;;  %v1657_v21 = vmul.f32 0.03125, %v1655_v51  ;;  %v2366_v19 = vld [vmem:[%s3060_s1 + $0xd8] sm:$0xff]   ;;  %s2478_s1 = smov [#allocation2]  }
0x1560   :  { %s2003_s3 = sshll.u32 %s2478_s1, 4  ;;  %s2004_s3 = int_to_ptr.vmem [resolvable:$true] %s2003_s3 }
0x1561   :  { %v1659_v23 = vadd.f32 1e-05, %v1657_v21  ;;  %s2447_s23 = scalar_lea.vmem %s2004_s3, 32  ;;  %p2452_p1 = scmp.lt.s32.totalorder %s2004_s3, %s2004_s3 }
0x1562   :  { %p2448_p0 = scmp.ne.s32.totalorder %s2004_s3, %s2447_s23  ;;  %p2453_p2 = scmp.lt.s32.totalorder %s2447_s23, %s2447_s23 }
0x1563   :  { %2441 = vrsqrt.f32 %v1659_v23 }
0x1564   :  { %p2454_p3 = por %p2453_p2, %p2452_p1 }
0x1566   :  { %p2455_p4 = pnand %p2454_p3, %p2448_p0 }
0x1569   :  { %v2440_v9 = vpop.eup %2439 }
0x156a   :  { %v1662_v25 = vmul.f32 %v2440_v9, %v1646_v57 }
0x156c   :  { %v1668_v0 = vmul.f32 %v2085_v26, %v1662_v25 }
0x156d   :  { %v2442_v22 = vpop.eup %2441 }
0x156e   :  { %v1663_v27 = vmul.f32 %v2442_v22, %v1647_v58  ;;  %v1674_v29 = vadd.f32 %v2086_v28, %v1668_v0 }
0x1570   :  { %v1669_v5 = vmul.f32 %v2085_v26, %v1663_v27 }
0x1572   :  { %v1675_v10 = vadd.f32 %v2086_v28, %v1669_v5 }
0x1574   :  { %v1746_v31 = vpack.c.bf16 %v1675_v10, %v1674_v29 }
0x1576   :  { %2298 = vmatmul.mubr.msk.bf16.vlgmr.msra.gmra.mrb[36].mxu0 %vm254_vm2, %v1746_v31 }
0x1577   :  { %2309 = vmatprep.mubr.msk.bf16.mxu0 %vm2473_vm4, %v2472_v44 }
0x1649   :  { %v1801_v38 = vpop.f32.mrb[36].mxu0 }
0x164a   :  { %v2299_v16 = vpop.f32.mrb[37].mxu0  ;;  %v1802_v47 = vadd.f32 %v2090_v37, %v1801_v38 }
0x164b   :  { %v1804_v45 = vpop.f32.mrb[38].mxu0 }
0x164c   :  { %v1805_v48 = vadd.f32 %v2090_v37, %v1804_v45  ;;  %v2300_v63 = vpop.f32.mrb[39].mxu0 }
0x164e   :  { %v1810_v8 = vpack.c.bf16 %v1805_v48, %v1802_v47 }
0x1650   :  { %v1815_v40 = vsel %vm254_vm2, %v1810_v8, 0 }
0x1651   :  { %2302 = vmatpush3.bf16.xpose.msra.mxu1 %v1815_v40 }
0x1652   :  { %2313 = vmatprep.subr.bf16.mxu1 %v2472_v44 }
0x1658   :  { %2304 = vmatmul.mubr.msk.bf16.vlgmr.msra.gmra.mrb[52].mxu1 %vm254_vm2, %v1809_v50 }
0x1659   :  { %2317 = vmatprep.mubr.msk.bf16.mxu1 %vm2473_vm4, %v2472_v44  ;;  %2314 = vmatpush3.bf16.msra.mxu1 %v2365_v17 }
0x165a   :  { %2315 = vmatprep.subr.bf16.mxu1 %v2472_v44  ;;  %v2096_v44 = vld [vmem:[%s3063_s4 + $0x1b] ss:$0 sm:$0xff] }
0x165d   :  { %2316 = vmatpush3.bf16.msra.mxu1 %v2366_v19 }
0x172b   :  { %v1851_v55 = vpop.f32.mrb[52].mxu1 }
0x172c   :  { %v1857_v57 = vmul.f32 0.35355338, %v1851_v55  ;;  %v2305_v59 = vpop.f32.mrb[53].mxu1 }
0x172d   :  { %v1854_v60 = vpop.f32.mrb[54].mxu1 }
0x172e   :  { %v1858_v1 = vadd.f32 %v1857_v57, %v92_v56  ;;  %v2306_v58 = vpop.f32.mrb[55].mxu1 }
0x1730   :  { %v1859_v2 = vsel %vm471_vm10, %v1858_v1, -inf }
0x1731   :  { %1860 = vmax.xlane.f32.xlu0 %v1859_v2 }
0x17be   :  { %v1861_v62 = vpop.xlane.xlu0 %1860 }
0x17bf   :  { %v1862_v41 = vsub.f32 %v1858_v1, %v1861_v62 }
0x17c1   :  { %v1863_v42 = vmul.f32 1.442695, %v1862_v41 }
0x17c3   :  { %2443 = vpow2.f32 %v1863_v42 }
0x17cd   :  { %v2444_v32 = vpop.eup %2443 }
0x17ce   :  { %v1865_v4 = vsel %vm471_vm10, %v2444_v32, 0.0 }
0x17cf   :  { %1866 = vadd.xlane.f32.xlu0 %v1865_v4 }
0x17e5   :  { %1872 = vrot.lane.b32.xlu0 %v1810_v8, %s2474_s13 }
0x185c   :  { %v1867_v3 = vpop.xlane.xlu0 %1866 }
0x185d   :  { %2445 = vrcp.f32 %v1867_v3 }
0x1860   :  { %v1873_v6 = vpop.permute.xlu0 %1872 }
0x1861   :  { %v1878_v11 = vsel %vm58_vm1, %v1873_v6, 0 }
0x1862   :  { %2308 = vmatpush3.bf16.msra.mxu0 %v1878_v11 }
0x1867   :  { %v2446_v14 = vpop.eup %2445 }
0x1868   :  { %v1869_v30 = vmul.f32 %v2446_v14, %v2444_v32 }
0x186a   :  { %v1870_v43 = vpack.c.bf16 %v1869_v30, %v1869_v30 }
0x186c   :  { %2310 = vmatmul.mubr.msk.bf16.vlgmr.msra.gmra.mrb[40].mxu0 %vm471_vm10, %v1870_v43 }
0x193f   :  { %v1914_v51 = vpop.f32.mrb[40].mxu0 }
0x1940   :  { %v1920_v21 = vmul.f32 %v1914_v51, %v80_v49  ;;  %v2311_v23 = vpop.f32.mrb[41].mxu0 }
0x1941   :  { %v1917_v9 = vpop.f32.mrb[42].mxu0 }
0x1942   :  { %v1922_v25 = vrot.slane %v1920_v21, 2  ;;  %v2312_v26 = vpop.f32.mrb[43].mxu0  ;;  %v1925_v0 = vrot.slane %v1920_v21, 4  ;;  %v1928_v28 = vrot.slane %v1920_v21, 6 }
0x1944   :  { %v1924_v22 = vadd.f32 %v1922_v25, %v1920_v21 }
0x1946   :  { %v1927_v27 = vadd.f32 %v1925_v0, %v1924_v22 }
0x1948   :  { %v1930_v5 = vadd.f32 %v1928_v28, %v1927_v27 }
0x194a   :  { %v1935_v29 = vpack.c.bf16 %v1930_v5, %v1930_v5 }
0x194c   :  { %2318 = vmatmul.mubr.msk.bf16.vlgmr.msra.gmra.mrb[56].mxu1 %vm254_vm2, %v1935_v29 }
0x1a1f   :  { %v1990_v10 = vpop.f32.mrb[56].mxu1 }
0x1a20   :  { %v1991_v31 = vadd.f32 %v2096_v44, %v1990_v10  ;;  %v2319_v33 = vpop.f32.mrb[57].mxu1 }
0x1a21   :  { %v1993_v34 = vpop.f32.mrb[58].mxu1 }
0x1a22   :  { %1996 = vst.msk [vmem:[#allocation2] sm:$0x3] %vm258_vm3, %v1991_v31  ;;  %v2320_v35 = vpop.f32.mrb[59].mxu1 }
0x1a23   :  { %2458 = shalt.err (!%p2455_p4)
}
0x1a24   :  { %s2459_s4 = scalar_lea.hbm %s3064_s5, 32 }
0x1a25   :  { %p2460_p5 = scmp.ne.s32.totalorder %s3064_s5, %s2459_s4  ;;  %p2463_p6 = scmp.lt.u32.totalorder %s2459_s4, %s3064_s5 }
0x1a27   :  { %p2465_p7 = pnand %p2463_p6, %p2460_p5 }
0x1a29   :  { %2468 = shalt.err (!%p2465_p7)
}
0x1a2a   :  { %2006 = dma.vmem_to_hbm [thread:$0]  %s2004_s3, 32, %s3064_s5, [#allocation3]  }
0x1a2b   :  { %2469 = dma.done.wait [#allocation3], 32  }
0x1a2c   :  { %2470 = vsyncadd [#allocation3], 4294967264 }
0x1a2d   :  { %2010 = vsyncpa [#allocation3], 1 }

</bundles_post_ra>
